<compile_context>
chip_gen: v6e
topology: v6e:2x2x1
jax: 0.10.0
libtpu: 0.0.40
codegen_flags: <defaults>
</compile_context>

<pallas_src>
import functools

import jax
import jax.numpy as jnp
from jax.experimental import pallas as pl
from jax.experimental.pallas import tpu as pltpu


# ---------------------------------------------------------------------------
# Small helpers
# ---------------------------------------------------------------------------
def _round_up(v, m):
    return ((v + m - 1) // m) * m


def _fast_recip(x):
    # EUP reciprocal (otherwise-idle slot) + one Newton step -> ~f32 accuracy.
    r = pl.reciprocal(x, approx=True)
    return r * (2.0 - x * r)


def _vmem_budget_bytes():
    """Explicit scoped-VMEM budget (generation aware where query-able)."""
    try:
        phys = int(pltpu.get_tpu_info().vmem_capacity_bytes)
    except Exception:
        phys = 64 * 1024 * 1024  # assume the tightest generation (v7x)
    # Leave ~40% of physical VMEM for compiler temporaries / double buffers and
    # cap well below every generation's physical size.
    return int(min(phys * 0.6, 96 * 1024 * 1024))


def _choose_row_tile(n, streamed_bytes_per_row, resident_bytes, budget):
    """Largest row tile whose double-buffered streams + residents fit VMEM."""
    for tm in (1024, 512, 256, 128, 64, 32, 16, 8):
        if tm > n:
            continue
        if resident_bytes + 2 * tm * streamed_bytes_per_row <= 0.75 * budget:
            return tm
    return min(n, 8)


# ---------------------------------------------------------------------------
# Kernel 1: layer-1 of all three GCN branches + the feature half of layer 2.
#   hw2[:, branch b] = relu(adj_b[tile] @ (x @ W1_b) + b1_b) @ W2_b
# x @ [W1s|W1c|W1f] is precomputed once in the wrapper and kept VMEM resident.
# ---------------------------------------------------------------------------
def mfgcn_layer1_kernel(sadj_ref, eadj_ref, fadj_ref, xw1_ref, b1cat_ref,
                        w2s_ref, w2c_ref, w2f_ref, hw2_ref,
                        *, nhid1, nhid2, h2cat_width):
    f32 = jnp.float32
    cd = hw2_ref.dtype

    def branch(adj_ref, col, w2_ref):
        support = xw1_ref[:, col * nhid1:(col + 1) * nhid1]      # x @ W1_b
        bias = b1cat_ref[:, col * nhid1:(col + 1) * nhid1]
        # GraphConvolution 1: adj @ (x @ W1) + b1, then ReLU.
        # Dropout is identity at inference.
        # TODO(synk): training-mode dropout via a pltpu.prng_random_bits mask.
        h1 = jnp.dot(adj_ref[...], support, preferred_element_type=f32) + bias
        h1 = jnp.maximum(h1, 0.0)
        # Feature half of GraphConvolution 2 (h1 @ W2); the adjacency half needs
        # h1 @ W2 for *all* rows and therefore runs in the second pass.
        return jnp.dot(h1.astype(cd), w2_ref[...], preferred_element_type=f32)

    parts = [branch(sadj_ref, 0, w2s_ref),
             branch(eadj_ref, 1, w2c_ref),
             branch(fadj_ref, 2, w2f_ref)]
    pad = h2cat_width - 3 * nhid2
    if pad:
        parts.append(jnp.zeros((parts[0].shape[0], pad), f32))
    # Single lane-dense store of the packed (tile, h2cat_width) block.
    hw2_ref[...] = jnp.concatenate(parts, axis=1).astype(cd)


# ---------------------------------------------------------------------------
# Kernel 2: second aggregation adj @ hw2 + b2 for all branches, branch fusion,
# linear head, log_softmax and Student-t soft assignment, packed lane-dense.
# ---------------------------------------------------------------------------
def mfgcn_layer2_head_kernel(sadj_ref, eadj_ref, fadj_ref, hw2_ref, b2cat_ref,
                             wm_ref, bm_ref, clus_t_ref, c2_ref,
                             emb_slab_ref, head_slab_ref,
                             *, nhid2, nclass, emb_width, head_width):
    f32 = jnp.float32

    def branch(adj_ref, col):
        hw2 = hw2_ref[:, col * nhid2:(col + 1) * nhid2]
        bias = b2cat_ref[:, col * nhid2:(col + 1) * nhid2]
        # GraphConvolution 2 aggregation: adj @ (h1 @ W2) + b2.
        return jnp.dot(adj_ref[...], hw2, preferred_element_type=f32) + bias

    emb1 = branch(sadj_ref, 0)
    com1 = branch(eadj_ref, 1)
    emb2 = branch(fadj_ref, 2)
    emb = (emb1 + emb2) * 0.5 + com1

    # Linear head + LogSoftmax(dim=1).
    out1 = jnp.dot(emb, wm_ref[...], preferred_element_type=f32) + bm_ref[...]
    z = out1 - jnp.max(out1, axis=1, keepdims=True)
    logp = z - jnp.log(jnp.sum(jnp.exp(z), axis=1, keepdims=True))

    # Student-t soft assignment (exponent (1+1)/2 == 1), MXU-friendly expansion
    # ||e||^2 + ||c||^2 - 2 e.c with a clamp at 0.
    # TODO(synk): switch to a direct squared-difference form if embeddings grow
    # large enough for f32 cancellation to matter.
    e2 = jnp.sum(emb * emb, axis=1, keepdims=True)
    ec = jnp.dot(emb, clus_t_ref[...], preferred_element_type=f32)
    d2 = jnp.maximum(e2 + c2_ref[...] - 2.0 * ec, 0.0)
    s = _fast_recip(1.0 + d2)
    s = s * _fast_recip(jnp.sum(s, axis=1, keepdims=True))

    tm = emb1.shape[0]

    # Packed lane-dense stores; the wrapper slices them apart.
    emb_parts = [emb1, com1, emb2, emb]
    pad_e = emb_width - 4 * nhid2
    if pad_e:
        emb_parts.append(jnp.zeros((tm, pad_e), f32))
    emb_slab_ref[...] = jnp.concatenate(emb_parts, axis=1).astype(
        emb_slab_ref.dtype)

    head_parts = [logp, s, out1]
    pad_h = head_width - 3 * nclass
    if pad_h:
        head_parts.append(jnp.zeros((tm, pad_h), f32))
    head_slab_ref[...] = jnp.concatenate(head_parts, axis=1).astype(
        head_slab_ref.dtype)


# ---------------------------------------------------------------------------
# Wrapper
# ---------------------------------------------------------------------------
@functools.partial(jax.jit, static_argnames=("compute_dtype", "row_tile"))
def mfgcn_forward(x, sadj, fadj, eadj, estimated_adj, params, *,
                  compute_dtype=jnp.bfloat16, row_tile=None):
    f32 = jnp.float32
    cd = jnp.dtype(compute_dtype)
    cd_b = cd.itemsize

    n, _ = x.shape
    w1s, b1s, w2s, b2s = params["sgcn1"]
    w1c, b1c, w2c, b2c = params["cgcn"]
    w1f, b1f, w2f, b2f = params["sgcn2"]
    wm, bm = params["m1"]
    cluster = params["cluster"]
    nhid1 = w1s.shape[1]
    nhid2 = w2s.shape[1]
    nclass = wm.shape[1]

    h1cat = 3 * nhid1
    h2cat = _round_up(3 * nhid2, 128)     # lane-dense intermediate width
    emb_w = _round_up(4 * nhid2, 128)     # [emb1 | com1 | emb2 | emb | pad]
    head_w = _round_up(3 * nclass, 128)   # [logp | s | out1 | pad]

    # Shared-operand fusion: x @ [W1s | W1c | W1f] exactly once (outside the
    # row grid; it must cover all N rows so it cannot be per-core scratch).
    w1cat = jnp.concatenate([w1s, w1c, w1f], axis=1)
    xw1 = jnp.dot(x.astype(cd), w1cat.astype(cd),
                  preferred_element_type=f32).astype(cd)

    b1cat = jnp.concatenate([b1s, b1c, b1f]).reshape(1, -1).astype(f32)
    b2cat = jnp.concatenate([b2s, b2c, b2f]).reshape(1, -1).astype(f32)
    clus_t = cluster.T.astype(f32)                               # (nhid2, C)
    c2 = jnp.sum(cluster.astype(f32) ** 2, axis=1).reshape(1, -1)

    adj_s = sadj.astype(cd)
    adj_e = eadj.astype(cd)
    adj_f = fadj.astype(cd)

    budget = _vmem_budget_bytes()
    if row_tile is not None:
        tm = int(row_tile)
    else:
        streamed = (3 * n + h2cat) * cd_b + (emb_w + head_w) * 4
        resident = max(n * h1cat * cd_b + 3 * nhid1 * nhid2 * cd_b,
                       n * h2cat * cd_b) + 64 * 1024
        tm = _choose_row_tile(n, streamed, resident, budget)
    tm = min(tm, n)
    if tm < n:
        tm = max(8, (tm // 8) * 8)        # (8,128) tiling constraint
    grid = (pl.cdiv(n, tm),)              # rows are independent -> ragged-safe

    compiler_params = pltpu.CompilerParams(
        dimension_semantics=("parallel",), vmem_limit_bytes=budget)

    def row_spec(width):
        return pl.BlockSpec((tm, width), lambda i: (i, 0))

    def resident_spec(shape):
        nd = len(shape)
        return pl.BlockSpec(shape, lambda *_: (0,) * nd)

    # ---- Pass 1: hw2 = relu(adj @ (x @ W1) + b1) @ W2, all branches ----------
    flops1 = 2 * 3 * n * n * nhid1 + 2 * 3 * n * nhid1 * nhid2
    bytes1 = (3 * n * n + n * h1cat + n * h2cat) * cd_b
    hw2 = pl.pallas_call(
        functools.partial(mfgcn_layer1_kernel, nhid1=nhid1, nhid2=nhid2,
                          h2cat_width=h2cat),
        grid=grid,
        in_specs=[row_spec(n), row_spec(n), row_spec(n),
                  resident_spec((n, h1cat)),
                  resident_spec((1, h1cat)),
                  resident_spec((nhid1, nhid2)),
                  resident_spec((nhid1, nhid2)),
                  resident_spec((nhid1, nhid2))],
        out_specs=pl.BlockSpec((tm, h2cat), lambda i: (i, 0)),
        out_shape=jax.ShapeDtypeStruct((n, h2cat), cd),
        compiler_params=compiler_params,
        cost_estimate=pl.CostEstimate(flops=int(flops1), transcendentals=0,
                                      bytes_accessed=int(bytes1)),
    )(adj_s, adj_e, adj_f, xw1, b1cat,
      w2s.astype(cd), w2c.astype(cd), w2f.astype(cd))

    # ---- Pass 2: adj @ hw2 + b2, branch fusion, head, log_softmax, Student-t -
    flops2 = 2 * 3 * n * n * nhid2 + 4 * n * nhid2 * nclass
    bytes2 = (3 * n * n + n * h2cat) * cd_b + n * (emb_w + head_w) * 4
    trans2 = 4 * n * nclass
    emb_slab, head_slab = pl.pallas_call(
        functools.partial(mfgcn_layer2_head_kernel, nhid2=nhid2, nclass=nclass,
                          emb_width=emb_w, head_width=head_w),
        grid=grid,
        in_specs=[row_spec(n), row_spec(n), row_spec(n),
                  resident_spec((n, h2cat)),
                  resident_spec((1, 3 * nhid2)),
                  resident_spec((nhid2, nclass)),
                  resident_spec((1, nclass)),
                  resident_spec((nhid2, nclass)),
                  resident_spec((1, nclass))],
        out_specs=(pl.BlockSpec((tm, emb_w), lambda i: (i, 0)),
                   pl.BlockSpec((tm, head_w), lambda i: (i, 0))),
        out_shape=(jax.ShapeDtypeStruct((n, emb_w), jnp.float32),
                   jax.ShapeDtypeStruct((n, head_w), jnp.float32)),
        compiler_params=compiler_params,
        cost_estimate=pl.CostEstimate(flops=int(flops2),
                                      transcendentals=int(trans2),
                                      bytes_accessed=int(bytes2)),
    )(adj_s, adj_e, adj_f, hw2, b2cat,
      wm.astype(f32), bm.reshape(1, -1).astype(f32), clus_t, c2)

    # Unpack the lane-dense slabs.
    emb1 = emb_slab[:, 0:nhid2]
    com1 = emb_slab[:, nhid2:2 * nhid2]
    emb2 = emb_slab[:, 2 * nhid2:3 * nhid2]
    emb = emb_slab[:, 3 * nhid2:4 * nhid2]
    logp = head_slab[:, 0:nclass]
    s = head_slab[:, nclass:2 * nclass]
    out1 = head_slab[:, 2 * nclass:3 * nclass]
    label = jnp.argmax(logp, axis=-1).astype(jnp.int32)
    weight_label = 0
    # Mirrors MFGCN.forward return tuple (com1 appears twice; att unused).
    return (logp, s, emb1, com1, com1, emb2, emb, estimated_adj, out1, label,
            weight_label)


# ---------------------------------------------------------------------------
# Module-init helpers (plain JAX; mirrors MFGCN.__init__ / GraphConvolution)
# ---------------------------------------------------------------------------
def sym_normalize(mx):
    """MFGCN._normalize: D^{-1/2} mx D^{-1/2} with inf -> 0."""
    rowsum = jnp.sum(mx, axis=1)
    r_inv = jnp.power(rowsum, -0.5)
    r_inv = jnp.where(jnp.isinf(r_inv), 0.0, r_inv)
    return (mx * r_inv[:, None]) * r_inv[None, :]


def gc_init(key, f_in, f_out):
    """GraphConvolution.reset_parameters: uniform(-1/sqrt(f_out), 1/sqrt(f_out))."""
    kw, kb = jax.random.split(key)
    stdv = 1.0 / (f_out ** 0.5)
    w = jax.random.uniform(kw, (f_in, f_out), jnp.float32, -stdv, stdv)
    b = jax.random.uniform(kb, (f_out,), jnp.float32, -stdv, stdv)
    return w, b


def gcn_init(key, f_in, f_hid, f_out):
    k1, k2 = jax.random.split(key)
    w1, b1 = gc_init(k1, f_in, f_hid)
    w2, b2 = gc_init(k2, f_hid, f_out)
    return (w1, b1, w2, b2)


# ---------------------------------------------------------------------------
# Pure-JAX reference (mirrors the PyTorch forward exactly, f32)
# ---------------------------------------------------------------------------
def mfgcn_reference(x, sadj, fadj, eadj, params):
    def gcn(x, adj, w1, b1, w2, b2):
        h = jnp.maximum(adj @ (x @ w1) + b1, 0.0)
        return adj @ (h @ w2) + b2   # dropout identity at eval

    emb1 = gcn(x, sadj, *params["sgcn1"])
    com1 = gcn(x, eadj, *params["cgcn"])
    emb2 = gcn(x, fadj, *params["sgcn2"])
    emb = (emb1 + emb2) * 0.5 + com1
    wm, bm = params["m1"]
    out1 = emb @ wm + bm
    logp = jax.nn.log_softmax(out1, axis=1)
    label = jnp.argmax(logp, axis=-1).astype(jnp.int32)
    clus = params["cluster"]
    d2 = jnp.sum((emb[:, None, :] - clus[None, :, :]) ** 2, axis=2)
    s = 1.0 / (1.0 + d2)
    s = s / jnp.sum(s, axis=1, keepdims=True)
    return logp, s, emb1, com1, emb2, emb, out1, label


# ---------------------------------------------------------------------------
# Harness
# ---------------------------------------------------------------------------
if __name__ == "__main__":
    N, NFEAT, NHID1, NHID2, NCLASS = 128, 16, 32, 64, 8
    ROW_TILE = 64                    # grid=(2,): exercises the tiled pipeline

    key = jax.random.PRNGKey(0)
    ks = jax.random.split(key, 10)

    x = jax.random.normal(ks[0], (N, NFEAT), jnp.float32)

    def rand_adj(k):
        a = (jax.random.uniform(k, (N, N)) < 0.15).astype(jnp.float32)
        a = jnp.maximum(a, a.T)                      # symmetric binary graph
        return sym_normalize(a + jnp.eye(N, dtype=jnp.float32))

    sadj = rand_adj(ks[1])
    fadj = rand_adj(ks[2])

    # MFGCN.__init__: estimated_adj <- (sadj+fadj)/2 ; normalized_adj <- _normalize(+I)
    estimated_adj = (sadj + fadj) * 0.5
    eadj = sym_normalize(estimated_adj + jnp.eye(N, dtype=jnp.float32))

    lin_stdv = 1.0 / (NHID2 ** 0.5)
    params = {
        "sgcn1": gcn_init(ks[3], NFEAT, NHID1, NHID2),
        "cgcn": gcn_init(ks[4], NFEAT, NHID1, NHID2),
        "sgcn2": gcn_init(ks[5], NFEAT, NHID1, NHID2),
        "m1": (
            jax.random.uniform(ks[6], (NHID2, NCLASS), jnp.float32,
                               -lin_stdv, lin_stdv),
            jax.random.uniform(ks[7], (NCLASS,), jnp.float32,
                               -lin_stdv, lin_stdv),
        ),
        # xavier_normal_: std = sqrt(2 / (fan_in + fan_out))
        "cluster": jax.random.normal(ks[8], (NCLASS, NHID2), jnp.float32)
        * (2.0 / (NCLASS + NHID2)) ** 0.5,
    }

    (r_logp, r_s, r_emb1, r_com1, r_emb2, r_emb, r_out1,
     r_label) = mfgcn_reference(x, sadj, fadj, eadj, params)

    def run_and_check(compute_dtype, atol, rtol, check_labels):
        outs = mfgcn_forward(x, sadj, fadj, eadj, estimated_adj, params,
                             compute_dtype=compute_dtype, row_tile=ROW_TILE)
        jax.block_until_ready(outs)
        (logp, s, emb1, com1, com1_dup, emb2, emb, est_out, out1, label,
         wl) = outs
        name_tag = jnp.dtype(compute_dtype).name
        checks = [(logp, r_logp, "output"), (s, r_s, "s"),
                  (emb1, r_emb1, "emb1"), (com1, r_com1, "com1"),
                  (com1_dup, r_com1, "com1_dup"), (emb2, r_emb2, "emb2"),
                  (emb, r_emb, "emb"), (out1, r_out1, "output1")]
        for got, want, name in checks:
            assert got.shape == want.shape, f"shape mismatch ({name_tag}): {name}"
            assert jnp.allclose(got, want, atol=atol, rtol=rtol), (
                f"mismatch ({name_tag}): {name}")
        if check_labels:
            assert jnp.array_equal(label, r_label), f"mismatch ({name_tag}): label"
        assert label.shape == (N,) and label.dtype == jnp.int32
        assert est_out.shape == (N, N)
        assert int(wl) == 0

    # Exact-semantics check: f32 end to end, tight tolerance, labels must match.
    run_and_check(jnp.float32, atol=2e-4, rtol=2e-4, check_labels=True)
    # bf16 fast path (f32 accumulation / f32 epilogue): loose sanity check vs the
    # f32 reference; labels can legitimately flip on near-ties so not asserted.
    run_and_check(jnp.bfloat16, atol=1e-1, rtol=1e-1, check_labels=False)

    print("KERNEL_OK")
</pallas_src>

<mosaic_0001>
module attributes {stable_mosaic.version = 11 : i64} {
  func.func @mfgcn_layer1_kernel(%arg0: i32, %arg1: memref<64x128xf32, #tpu.memory_space<vmem>>, %arg2: memref<64x128xf32, #tpu.memory_space<vmem>>, %arg3: memref<64x128xf32, #tpu.memory_space<vmem>>, %arg4: memref<128x96xf32, #tpu.memory_space<vmem>>, %arg5: memref<1x96xf32, #tpu.memory_space<vmem>>, %arg6: memref<32x64xf32, #tpu.memory_space<vmem>>, %arg7: memref<32x64xf32, #tpu.memory_space<vmem>>, %arg8: memref<32x64xf32, #tpu.memory_space<vmem>>, %arg9: memref<64x256xf32, #tpu.memory_space<vmem>>) attributes {dimension_semantics = [#tpu.dimension_semantics<parallel>], iteration_bounds = array<i64: 2>, scalar_prefetch = 0 : i64, scratch_operands = 0 : i64, tpu.core_type = #tpu.core_type<tc>, window_params = [{transform_indices = @transform_0, window_bounds = array<i64: 64, 128>}, {transform_indices = @transform_1, window_bounds = array<i64: 64, 128>}, {transform_indices = @transform_2, window_bounds = array<i64: 64, 128>}, {pipeline_mode = #tpu.pipeline_mode<synchronous>, transform_indices = @transform_3, window_bounds = array<i64: 128, 96>}, {pipeline_mode = #tpu.pipeline_mode<synchronous>, transform_indices = @transform_4, window_bounds = array<i64: 1, 96>}, {pipeline_mode = #tpu.pipeline_mode<synchronous>, transform_indices = @transform_5, window_bounds = array<i64: 32, 64>}, {pipeline_mode = #tpu.pipeline_mode<synchronous>, transform_indices = @transform_6, window_bounds = array<i64: 32, 64>}, {pipeline_mode = #tpu.pipeline_mode<synchronous>, transform_indices = @transform_7, window_bounds = array<i64: 32, 64>}, {transform_indices = @transform_8, window_bounds = array<i64: 64, 256>}]} {
    %c0 = arith.constant 0 : index
    %c0_0 = arith.constant 0 : index
    %0 = vector.load %arg4[%c0, %c0_0] : memref<128x96xf32, #tpu.memory_space<vmem>>, vector<128x32xf32>
    %c0_1 = arith.constant 0 : index
    %c0_2 = arith.constant 0 : index
    %1 = vector.load %arg5[%c0_1, %c0_2] : memref<1x96xf32, #tpu.memory_space<vmem>>, vector<1x32xf32>
    %c0_3 = arith.constant 0 : index
    %c0_4 = arith.constant 0 : index
    %2 = vector.load %arg1[%c0_3, %c0_4] : memref<64x128xf32, #tpu.memory_space<vmem>>, vector<64x128xf32>
    %cst = arith.constant dense<0.000000e+00> : vector<64x32xf32>
    %3 = tpu.matmul %2, %0, %cst {dimension_numbers = #tpu.dot_dimension_numbers<[1], [0], [0], [1], [0, 0, 1, 1], [], []>} : vector<64x128xf32>, vector<128x32xf32>, vector<64x32xf32> -> vector<64x32xf32>
    %4 = vector.broadcast %1 : vector<1x32xf32> to vector<64x32xf32>
    %5 = arith.addf %3, %4 : vector<64x32xf32>
    %cst_5 = arith.constant 0.000000e+00 : f32
    %6 = vector.broadcast %cst_5 : f32 to vector<64x32xf32>
    %7 = arith.maximumf %5, %6 : vector<64x32xf32>
    %c0_6 = arith.constant 0 : index
    %c0_7 = arith.constant 0 : index
    %8 = vector.load %arg6[%c0_6, %c0_7] : memref<32x64xf32, #tpu.memory_space<vmem>>, vector<32x64xf32>
    %cst_8 = arith.constant dense<0.000000e+00> : vector<64x64xf32>
    %9 = tpu.matmul %7, %8, %cst_8 {dimension_numbers = #tpu.dot_dimension_numbers<[1], [0], [0], [1], [0, 0, 1, 1], [], []>} : vector<64x32xf32>, vector<32x64xf32>, vector<64x64xf32> -> vector<64x64xf32>
    %c0_9 = arith.constant 0 : index
    %c32 = arith.constant 32 : index
    %10 = vector.load %arg4[%c0_9, %c32] : memref<128x96xf32, #tpu.memory_space<vmem>>, vector<128x32xf32>
    %c0_10 = arith.constant 0 : index
    %c32_11 = arith.constant 32 : index
    %11 = vector.load %arg5[%c0_10, %c32_11] : memref<1x96xf32, #tpu.memory_space<vmem>>, vector<1x32xf32>
    %c0_12 = arith.constant 0 : index
    %c0_13 = arith.constant 0 : index
    %12 = vector.load %arg2[%c0_12, %c0_13] : memref<64x128xf32, #tpu.memory_space<vmem>>, vector<64x128xf32>
    %cst_14 = arith.constant dense<0.000000e+00> : vector<64x32xf32>
    %13 = tpu.matmul %12, %10, %cst_14 {dimension_numbers = #tpu.dot_dimension_numbers<[1], [0], [0], [1], [0, 0, 1, 1], [], []>} : vector<64x128xf32>, vector<128x32xf32>, vector<64x32xf32> -> vector<64x32xf32>
    %14 = vector.broadcast %11 : vector<1x32xf32> to vector<64x32xf32>
    %15 = arith.addf %13, %14 : vector<64x32xf32>
    %cst_15 = arith.constant 0.000000e+00 : f32
    %16 = vector.broadcast %cst_15 : f32 to vector<64x32xf32>
    %17 = arith.maximumf %15, %16 : vector<64x32xf32>
    %c0_16 = arith.constant 0 : index
    %c0_17 = arith.constant 0 : index
    %18 = vector.load %arg7[%c0_16, %c0_17] : memref<32x64xf32, #tpu.memory_space<vmem>>, vector<32x64xf32>
    %cst_18 = arith.constant dense<0.000000e+00> : vector<64x64xf32>
    %19 = tpu.matmul %17, %18, %cst_18 {dimension_numbers = #tpu.dot_dimension_numbers<[1], [0], [0], [1], [0, 0, 1, 1], [], []>} : vector<64x32xf32>, vector<32x64xf32>, vector<64x64xf32> -> vector<64x64xf32>
    %c0_19 = arith.constant 0 : index
    %c64 = arith.constant 64 : index
    %20 = vector.load %arg4[%c0_19, %c64] : memref<128x96xf32, #tpu.memory_space<vmem>>, vector<128x32xf32>
    %c0_20 = arith.constant 0 : index
    %c64_21 = arith.constant 64 : index
    %21 = vector.load %arg5[%c0_20, %c64_21] : memref<1x96xf32, #tpu.memory_space<vmem>>, vector<1x32xf32>
    %c0_22 = arith.constant 0 : index
    %c0_23 = arith.constant 0 : index
    %22 = vector.load %arg3[%c0_22, %c0_23] : memref<64x128xf32, #tpu.memory_space<vmem>>, vector<64x128xf32>
    %cst_24 = arith.constant dense<0.000000e+00> : vector<64x32xf32>
    %23 = tpu.matmul %22, %20, %cst_24 {dimension_numbers = #tpu.dot_dimension_numbers<[1], [0], [0], [1], [0, 0, 1, 1], [], []>} : vector<64x128xf32>, vector<128x32xf32>, vector<64x32xf32> -> vector<64x32xf32>
    %24 = vector.broadcast %21 : vector<1x32xf32> to vector<64x32xf32>
    %25 = arith.addf %23, %24 : vector<64x32xf32>
    %cst_25 = arith.constant 0.000000e+00 : f32
    %26 = vector.broadcast %cst_25 : f32 to vector<64x32xf32>
    %27 = arith.maximumf %25, %26 : vector<64x32xf32>
    %c0_26 = arith.constant 0 : index
    %c0_27 = arith.constant 0 : index
    %28 = vector.load %arg8[%c0_26, %c0_27] : memref<32x64xf32, #tpu.memory_space<vmem>>, vector<32x64xf32>
    %cst_28 = arith.constant dense<0.000000e+00> : vector<64x64xf32>
    %29 = tpu.matmul %27, %28, %cst_28 {dimension_numbers = #tpu.dot_dimension_numbers<[1], [0], [0], [1], [0, 0, 1, 1], [], []>} : vector<64x32xf32>, vector<32x64xf32>, vector<64x64xf32> -> vector<64x64xf32>
    %cst_29 = arith.constant 0.000000e+00 : f32
    %30 = vector.broadcast %cst_29 : f32 to vector<64x64xf32>
    %31 = tpu.concatenate %9, %19, %29, %30 in 1 : vector<64x64xf32>, vector<64x64xf32>, vector<64x64xf32>, vector<64x64xf32> -> vector<64x256xf32>
    %c0_30 = arith.constant 0 : index
    %c0_31 = arith.constant 0 : index
    %32 = vector.load %arg9[%c0_30, %c0_31] : memref<64x256xf32, #tpu.memory_space<vmem>>, vector<64x256xf32>
    tpu.vector_store %arg9[%c0_30, %c0_31], %31 {strides = array<i32>} : memref<64x256xf32, #tpu.memory_space<vmem>>, vector<64x256xf32>,
    return
  }
  func.func @transform_0(%arg0: i32) -> (i32, i32) {
    %c0_i32 = arith.constant 0 : i32
    %c0_i32_0 = arith.constant 0 : i32
    return %arg0, %c0_i32 : i32, i32
  }
  func.func @transform_1(%arg0: i32) -> (i32, i32) {
    %c0_i32 = arith.constant 0 : i32
    %c0_i32_0 = arith.constant 0 : i32
    return %arg0, %c0_i32 : i32, i32
  }
  func.func @transform_2(%arg0: i32) -> (i32, i32) {
    %c0_i32 = arith.constant 0 : i32
    %c0_i32_0 = arith.constant 0 : i32
    return %arg0, %c0_i32 : i32, i32
  }
  func.func @transform_3(%arg0: i32) -> (i32, i32) {
    %c0_i32 = arith.constant 0 : i32
    %c0_i32_0 = arith.constant 0 : i32
    %c0_i32_1 = arith.constant 0 : i32
    return %c0_i32, %c0_i32_0 : i32, i32
  }
  func.func @transform_4(%arg0: i32) -> (i32, i32) {
    %c0_i32 = arith.constant 0 : i32
    %c0_i32_0 = arith.constant 0 : i32
    %c0_i32_1 = arith.constant 0 : i32
    return %c0_i32, %c0_i32_0 : i32, i32
  }
  func.func @transform_5(%arg0: i32) -> (i32, i32) {
    %c0_i32 = arith.constant 0 : i32
    %c0_i32_0 = arith.constant 0 : i32
    %c0_i32_1 = arith.constant 0 : i32
    return %c0_i32, %c0_i32_0 : i32, i32
  }
  func.func @transform_6(%arg0: i32) -> (i32, i32) {
    %c0_i32 = arith.constant 0 : i32
    %c0_i32_0 = arith.constant 0 : i32
    %c0_i32_1 = arith.constant 0 : i32
    return %c0_i32, %c0_i32_0 : i32, i32
  }
  func.func @transform_7(%arg0: i32) -> (i32, i32) {
    %c0_i32 = arith.constant 0 : i32
    %c0_i32_0 = arith.constant 0 : i32
    %c0_i32_1 = arith.constant 0 : i32
    return %c0_i32, %c0_i32_0 : i32, i32
  }
  func.func @transform_8(%arg0: i32) -> (i32, i32) {
    %c0_i32 = arith.constant 0 : i32
    %c0_i32_0 = arith.constant 0 : i32
    return %arg0, %c0_i32 : i32, i32
  }
}

module attributes {stable_mosaic.version = 11 : i64} {
  func.func @mfgcn_layer2_head_kernel(%arg0: i32, %arg1: memref<64x128xf32, #tpu.memory_space<vmem>>, %arg2: memref<64x128xf32, #tpu.memory_space<vmem>>, %arg3: memref<64x128xf32, #tpu.memory_space<vmem>>, %arg4: memref<128x256xf32, #tpu.memory_space<vmem>>, %arg5: memref<1x192xf32, #tpu.memory_space<vmem>>, %arg6: memref<64x8xf32, #tpu.memory_space<vmem>>, %arg7: memref<1x8xf32, #tpu.memory_space<vmem>>, %arg8: memref<64x8xf32, #tpu.memory_space<vmem>>, %arg9: memref<1x8xf32, #tpu.memory_space<vmem>>, %arg10: memref<64x256xf32, #tpu.memory_space<vmem>>, %arg11: memref<64x128xf32, #tpu.memory_space<vmem>>) attributes {dimension_semantics = [#tpu.dimension_semantics<parallel>], iteration_bounds = array<i64: 2>, scalar_prefetch = 0 : i64, scratch_operands = 0 : i64, tpu.core_type = #tpu.core_type<tc>, window_params = [{transform_indices = @transform_0, window_bounds = array<i64: 64, 128>}, {transform_indices = @transform_1, window_bounds = array<i64: 64, 128>}, {transform_indices = @transform_2, window_bounds = array<i64: 64, 128>}, {pipeline_mode = #tpu.pipeline_mode<synchronous>, transform_indices = @transform_3, window_bounds = array<i64: 128, 256>}, {pipeline_mode = #tpu.pipeline_mode<synchronous>, transform_indices = @transform_4, window_bounds = array<i64: 1, 192>}, {pipeline_mode = #tpu.pipeline_mode<synchronous>, transform_indices = @transform_5, window_bounds = array<i64: 64, 8>}, {pipeline_mode = #tpu.pipeline_mode<synchronous>, transform_indices = @transform_6, window_bounds = array<i64: 1, 8>}, {pipeline_mode = #tpu.pipeline_mode<synchronous>, transform_indices = @transform_7, window_bounds = array<i64: 64, 8>}, {pipeline_mode = #tpu.pipeline_mode<synchronous>, transform_indices = @transform_8, window_bounds = array<i64: 1, 8>}, {transform_indices = @transform_9, window_bounds = array<i64: 64, 256>}, {transform_indices = @transform_10, window_bounds = array<i64: 64, 128>}]} {
    %c0 = arith.constant 0 : index
    %c0_0 = arith.constant 0 : index
    %0 = vector.load %arg4[%c0, %c0_0] : memref<128x256xf32, #tpu.memory_space<vmem>>, vector<128x64xf32>
    %c0_1 = arith.constant 0 : index
    %c0_2 = arith.constant 0 : index
    %1 = vector.load %arg5[%c0_1, %c0_2] : memref<1x192xf32, #tpu.memory_space<vmem>>, vector<1x64xf32>
    %c0_3 = arith.constant 0 : index
    %c0_4 = arith.constant 0 : index
    %2 = vector.load %arg1[%c0_3, %c0_4] : memref<64x128xf32, #tpu.memory_space<vmem>>, vector<64x128xf32>
    %cst = arith.constant dense<0.000000e+00> : vector<64x64xf32>
    %3 = tpu.matmul %2, %0, %cst {dimension_numbers = #tpu.dot_dimension_numbers<[1], [0], [0], [1], [0, 0, 1, 1], [], []>} : vector<64x128xf32>, vector<128x64xf32>, vector<64x64xf32> -> vector<64x64xf32>
    %4 = vector.broadcast %1 : vector<1x64xf32> to vector<64x64xf32>
    %5 = arith.addf %3, %4 : vector<64x64xf32>
    %c0_5 = arith.constant 0 : index
    %c64 = arith.constant 64 : index
    %6 = vector.load %arg4[%c0_5, %c64] : memref<128x256xf32, #tpu.memory_space<vmem>>, vector<128x64xf32>
    %c0_6 = arith.constant 0 : index
    %c64_7 = arith.constant 64 : index
    %7 = vector.load %arg5[%c0_6, %c64_7] : memref<1x192xf32, #tpu.memory_space<vmem>>, vector<1x64xf32>
    %c0_8 = arith.constant 0 : index
    %c0_9 = arith.constant 0 : index
    %8 = vector.load %arg2[%c0_8, %c0_9] : memref<64x128xf32, #tpu.memory_space<vmem>>, vector<64x128xf32>
    %cst_10 = arith.constant dense<0.000000e+00> : vector<64x64xf32>
    %9 = tpu.matmul %8, %6, %cst_10 {dimension_numbers = #tpu.dot_dimension_numbers<[1], [0], [0], [1], [0, 0, 1, 1], [], []>} : vector<64x128xf32>, vector<128x64xf32>, vector<64x64xf32> -> vector<64x64xf32>
    %10 = vector.broadcast %7 : vector<1x64xf32> to vector<64x64xf32>
    %11 = arith.addf %9, %10 : vector<64x64xf32>
    %c0_11 = arith.constant 0 : index
    %c128 = arith.constant 128 : index
    %12 = vector.load %arg4[%c0_11, %c128] : memref<128x256xf32, #tpu.memory_space<vmem>>, vector<128x64xf32>
    %c0_12 = arith.constant 0 : index
    %c128_13 = arith.constant 128 : index
    %13 = vector.load %arg5[%c0_12, %c128_13] : memref<1x192xf32, #tpu.memory_space<vmem>>, vector<1x64xf32>
    %c0_14 = arith.constant 0 : index
    %c0_15 = arith.constant 0 : index
    %14 = vector.load %arg3[%c0_14, %c0_15] : memref<64x128xf32, #tpu.memory_space<vmem>>, vector<64x128xf32>
    %cst_16 = arith.constant dense<0.000000e+00> : vector<64x64xf32>
    %15 = tpu.matmul %14, %12, %cst_16 {dimension_numbers = #tpu.dot_dimension_numbers<[1], [0], [0], [1], [0, 0, 1, 1], [], []>} : vector<64x128xf32>, vector<128x64xf32>, vector<64x64xf32> -> vector<64x64xf32>
    %16 = vector.broadcast %13 : vector<1x64xf32> to vector<64x64xf32>
    %17 = arith.addf %15, %16 : vector<64x64xf32>
    %18 = arith.addf %5, %17 : vector<64x64xf32>
    %cst_17 = arith.constant 5.000000e-01 : f32
    %19 = vector.broadcast %cst_17 : f32 to vector<64x64xf32>
    %20 = arith.mulf %18, %19 : vector<64x64xf32>
    %21 = arith.addf %20, %11 : vector<64x64xf32>
    %c0_18 = arith.constant 0 : index
    %c0_19 = arith.constant 0 : index
    %22 = vector.load %arg6[%c0_18, %c0_19] : memref<64x8xf32, #tpu.memory_space<vmem>>, vector<64x8xf32>
    %cst_20 = arith.constant dense<0.000000e+00> : vector<64x8xf32>
    %23 = tpu.matmul %21, %22, %cst_20 {dimension_numbers = #tpu.dot_dimension_numbers<[1], [0], [0], [1], [0, 0, 1, 1], [], []>} : vector<64x64xf32>, vector<64x8xf32>, vector<64x8xf32> -> vector<64x8xf32>
    %c0_21 = arith.constant 0 : index
    %c0_22 = arith.constant 0 : index
    %24 = vector.load %arg7[%c0_21, %c0_22] : memref<1x8xf32, #tpu.memory_space<vmem>>, vector<1x8xf32>
    %25 = vector.broadcast %24 : vector<1x8xf32> to vector<64x8xf32>
    %26 = arith.addf %23, %25 : vector<64x8xf32>
    %cst_23 = arith.constant dense<0xFF800000> : vector<64xf32>
    %27 = vector.multi_reduction <maximumf>, %26, %cst_23 [1] : vector<64x8xf32> to vector<64xf32>
    %28 = vector.shape_cast %27 : vector<64xf32> to vector<64x1xf32>
    %29 = vector.broadcast %28 : vector<64x1xf32> to vector<64x8xf32>
    %30 = arith.subf %26, %29 : vector<64x8xf32>
    %31 = math.exp %30 : vector<64x8xf32>
    %cst_24 = arith.constant dense<0.000000e+00> : vector<64xf32>
    %32 = vector.multi_reduction <add>, %31, %cst_24 [1] : vector<64x8xf32> to vector<64xf32>
    %33 = vector.shape_cast %32 : vector<64xf32> to vector<64x1xf32>
    %34 = math.log %33 : vector<64x1xf32>
    %35 = vector.broadcast %34 : vector<64x1xf32> to vector<64x8xf32>
    %36 = arith.subf %30, %35 : vector<64x8xf32>
    %37 = arith.mulf %21, %21 : vector<64x64xf32>
    %cst_25 = arith.constant dense<0.000000e+00> : vector<64xf32>
    %38 = vector.multi_reduction <add>, %37, %cst_25 [1] : vector<64x64xf32> to vector<64xf32>
    %39 = vector.shape_cast %38 : vector<64xf32> to vector<64x1xf32>
    %c0_26 = arith.constant 0 : index
    %c0_27 = arith.constant 0 : index
    %40 = vector.load %arg8[%c0_26, %c0_27] : memref<64x8xf32, #tpu.memory_space<vmem>>, vector<64x8xf32>
    %cst_28 = arith.constant dense<0.000000e+00> : vector<64x8xf32>
    %41 = tpu.matmul %21, %40, %cst_28 {dimension_numbers = #tpu.dot_dimension_numbers<[1], [0], [0], [1], [0, 0, 1, 1], [], []>} : vector<64x64xf32>, vector<64x8xf32>, vector<64x8xf32> -> vector<64x8xf32>
    %c0_29 = arith.constant 0 : index
    %c0_30 = arith.constant 0 : index
    %42 = vector.load %arg9[%c0_29, %c0_30] : memref<1x8xf32, #tpu.memory_space<vmem>>, vector<1x8xf32>
    %43 = vector.broadcast %39 : vector<64x1xf32> to vector<64x8xf32>
    %44 = vector.broadcast %42 : vector<1x8xf32> to vector<64x8xf32>
    %45 = arith.addf %43, %44 : vector<64x8xf32>
    %cst_31 = arith.constant 2.000000e+00 : f32
    %46 = vector.broadcast %cst_31 : f32 to vector<64x8xf32>
    %47 = arith.mulf %46, %41 : vector<64x8xf32>
    %48 = arith.subf %45, %47 : vector<64x8xf32>
    %cst_32 = arith.constant 0.000000e+00 : f32
    %49 = vector.broadcast %cst_32 : f32 to vector<64x8xf32>
    %50 = arith.maximumf %48, %49 : vector<64x8xf32>
    %cst_33 = arith.constant 1.000000e+00 : f32
    %51 = vector.broadcast %cst_33 : f32 to vector<64x8xf32>
    %52 = arith.addf %51, %50 : vector<64x8xf32>
    %53 = tpu.reciprocal %52 {approx = true} : vector<64x8xf32> -> vector<64x8xf32>
    %54 = arith.mulf %52, %53 : vector<64x8xf32>
    %cst_34 = arith.constant 2.000000e+00 : f32
    %55 = vector.broadcast %cst_34 : f32 to vector<64x8xf32>
    %56 = arith.subf %55, %54 : vector<64x8xf32>
    %57 = arith.mulf %53, %56 : vector<64x8xf32>
    %cst_35 = arith.constant dense<0.000000e+00> : vector<64xf32>
    %58 = vector.multi_reduction <add>, %57, %cst_35 [1] : vector<64x8xf32> to vector<64xf32>
    %59 = vector.shape_cast %58 : vector<64xf32> to vector<64x1xf32>
    %60 = tpu.reciprocal %59 {approx = true} : vector<64x1xf32> -> vector<64x1xf32>
    %61 = arith.mulf %59, %60 : vector<64x1xf32>
    %cst_36 = arith.constant 2.000000e+00 : f32
    %62 = vector.broadcast %cst_36 : f32 to vector<64x1xf32>
    %63 = arith.subf %62, %61 : vector<64x1xf32>
    %64 = arith.mulf %60, %63 : vector<64x1xf32>
    %65 = vector.broadcast %64 : vector<64x1xf32> to vector<64x8xf32>
    %66 = arith.mulf %57, %65 : vector<64x8xf32>
    %67 = tpu.concatenate %5, %11, %17, %21 in 1 : vector<64x64xf32>, vector<64x64xf32>, vector<64x64xf32>, vector<64x64xf32> -> vector<64x256xf32>
    %c0_37 = arith.constant 0 : index
    %c0_38 = arith.constant 0 : index
    %68 = vector.load %arg10[%c0_37, %c0_38] : memref<64x256xf32, #tpu.memory_space<vmem>>, vector<64x256xf32>
    tpu.vector_store %arg10[%c0_37, %c0_38], %67 {strides = array<i32>} : memref<64x256xf32, #tpu.memory_space<vmem>>, vector<64x256xf32>,
    %cst_39 = arith.constant 0.000000e+00 : f32
    %69 = vector.broadcast %cst_39 : f32 to vector<64x104xf32>
    %70 = tpu.concatenate %36, %66, %26, %69 in 1 : vector<64x8xf32>, vector<64x8xf32>, vector<64x8xf32>, vector<64x104xf32> -> vector<64x128xf32>
    %c0_40 = arith.constant 0 : index
    %c0_41 = arith.constant 0 : index
    %71 = vector.load %arg11[%c0_40, %c0_41] : memref<64x128xf32, #tpu.memory_space<vmem>>, vector<64x128xf32>
    tpu.vector_store %arg11[%c0_40, %c0_41], %70 {strides = array<i32>} : memref<64x128xf32, #tpu.memory_space<vmem>>, vector<64x128xf32>,
    return
  }
  func.func @transform_0(%arg0: i32) -> (i32, i32) {
    %c0_i32 = arith.constant 0 : i32
    %c0_i32_0 = arith.constant 0 : i32
    return %arg0, %c0_i32 : i32, i32
  }
  func.func @transform_1(%arg0: i32) -> (i32, i32) {
    %c0_i32 = arith.constant 0 : i32
    %c0_i32_0 = arith.constant 0 : i32
    return %arg0, %c0_i32 : i32, i32
  }
  func.func @transform_2(%arg0: i32) -> (i32, i32) {
    %c0_i32 = arith.constant 0 : i32
    %c0_i32_0 = arith.constant 0 : i32
    return %arg0, %c0_i32 : i32, i32
  }
  func.func @transform_3(%arg0: i32) -> (i32, i32) {
    %c0_i32 = arith.constant 0 : i32
    %c0_i32_0 = arith.constant 0 : i32
    %c0_i32_1 = arith.constant 0 : i32
    return %c0_i32, %c0_i32_0 : i32, i32
  }
  func.func @transform_4(%arg0: i32) -> (i32, i32) {
    %c0_i32 = arith.constant 0 : i32
    %c0_i32_0 = arith.constant 0 : i32
    %c0_i32_1 = arith.constant 0 : i32
    return %c0_i32, %c0_i32_0 : i32, i32
  }
  func.func @transform_5(%arg0: i32) -> (i32, i32) {
    %c0_i32 = arith.constant 0 : i32
    %c0_i32_0 = arith.constant 0 : i32
    %c0_i32_1 = arith.constant 0 : i32
    return %c0_i32, %c0_i32_0 : i32, i32
  }
  func.func @transform_6(%arg0: i32) -> (i32, i32) {
    %c0_i32 = arith.constant 0 : i32
    %c0_i32_0 = arith.constant 0 : i32
    %c0_i32_1 = arith.constant 0 : i32
    return %c0_i32, %c0_i32_0 : i32, i32
  }
  func.func @transform_7(%arg0: i32) -> (i32, i32) {
    %c0_i32 = arith.constant 0 : i32
    %c0_i32_0 = arith.constant 0 : i32
    %c0_i32_1 = arith.constant 0 : i32
    return %c0_i32, %c0_i32_0 : i32, i32
  }
  func.func @transform_8(%arg0: i32) -> (i32, i32) {
    %c0_i32 = arith.constant 0 : i32
    %c0_i32_0 = arith.constant 0 : i32
    %c0_i32_1 = arith.constant 0 : i32
    return %c0_i32, %c0_i32_0 : i32, i32
  }
  func.func @transform_9(%arg0: i32) -> (i32, i32) {
    %c0_i32 = arith.constant 0 : i32
    %c0_i32_0 = arith.constant 0 : i32
    return %arg0, %c0_i32 : i32, i32
  }
  func.func @transform_10(%arg0: i32) -> (i32, i32) {
    %c0_i32 = arith.constant 0 : i32
    %c0_i32_0 = arith.constant 0 : i32
    return %arg0, %c0_i32 : i32, i32
  }
}

</mosaic_0001>

<bundles_post_ra>
// kernel: mfgcn_forward.2
= control target key start
LH: loop header
LB: loop body
LE: loop exit
PB: predicated region body
PF: predicated region fallthrough
CT: control target
= control target key end

     0   :  { %s2538_s0 = inlined_call_operand.vmem [shape: f32[128,128], index: 0, kind: input, shape index: {}]   ;;  %s2539_s1 = inlined_call_operand.hbm [shape: f32[128,128], index: 1, kind: input, shape index: {}]   ;;  %s2540_s2 = inlined_call_operand.hbm [shape: f32[128,128], index: 2, kind: input, shape index: {}]   ;;  %s2541_s3 = inlined_call_operand.vmem [shape: f32[128,96], index: 3, kind: input, shape index: {}]   ;;  %s2542_s4 = inlined_call_operand.vmem [shape: f32[1,96], index: 4, kind: input, shape index: {}]   ;;  %s2543_s5 = inlined_call_operand.vmem [shape: f32[32,64], index: 5, kind: input, shape index: {}]   ;;  %s2544_s6 = inlined_call_operand.vmem [shape: f32[32,64], index: 6, kind: input, shape index: {}]   ;;  %s2545_s7 = inlined_call_operand.hbm [shape: f32[32,64], index: 7, kind: input, shape index: {}]   ;;  %s2546_s8 = inlined_call_operand.vmem [shape: f32[128,256], index: 8, kind: output, shape index: {}]  }
   0x1   :  { %2553 = sst [smem:[#allocation10_spill]] %s2539_s1 }
   0x2   :  { %2554 = sst [smem:[#allocation11_spill]] %s2545_s7 }
   0x3   :  { %13 = vsyncpa [#allocation3], 0 }
   0x4   :  { %15 = vsyncpa [#allocation3 + $0x1], 0 }
   0x5   :  { %16 = vsyncpa [#allocation5], 0 }
   0x6   :  { %18 = vsyncpa [#allocation5 + $0x1], 0  ;;  %s2076_s27 = smov 0   ;;  %s2078_s28 = smov 0  }
   0x7   :  { %s2080_s29 = smov 0   ;;  %s2082_s30 = smov 0  }
   0x8 LB: > { %s2095_s9 = sadd.s32 4294967295, %s2022_s30   ;;  %p70_p0 = scmp.ne.s32.totalorder %s2014_s28, %s2010_s27  ;;  %s2022_s30 = sphi %s2082_s30, %s2569_s30   ;;  %s2018_s29 = sphi %s2080_s29, %s2568_s29   ;;  %s2014_s28 = sphi %s2078_s28, %s2567_s28   ;;  %s2010_s27 = sphi %s2076_s27, %s2566_s27  }
   0x9   : > { %p2551_p1 = scmp.eq.s32.totalorder %s2095_s9, 0  ;;  %p1491_p2 = scmp.ge.s32.totalorder %s2022_s30, 1 }
   0xa   : > { %p238_p3 = scmp.lt.s32.totalorder %s2022_s30, 3  ;;  %s2024_s12 = smov [#allocation6]  }
   0xb   : > { %p2103_p4 = por %p2551_p1, %p70_p0  ;;  %s262_s13 = sshll.u32 %s2024_s12, 4  ;;  %s263_s13 = int_to_ptr.vmem [resolvable:$true] %s262_s13 }
   0xc   : > { %p2107_p5 = pnand %p1491_p2, %p238_p3  ;;  %s2120_s15 = sadd.s32 1, %s2022_s30  }
   0xd   : > { %s2555_s10 = scalar_select %p2103_p4, 1, 0 }
   0xe   : > { %p1847_p6 = pneg %p2107_p5  ;;  %s57_s16 = sadd.s32 1, %s2018_s29 }
   0xf   : > { %s54_s17 = ssub.s32 %s2022_s30, %s2120_s15  ;;  %s1909_s18 = scalar_lea.vmem %s263_s13, 512 }
  0x10   : > { %p2115_p7 = pnand %p1847_p6, %p2551_p1  ;;  %p1910_p9 = scmp.ne.s32.totalorder %s263_s13, %s1909_s18 }
  0x11   : > { %p1917_p12 = scmp.lt.s32.totalorder %s263_s13, %s263_s13  ;;  %p1918_p13 = scmp.lt.s32.totalorder %s1909_s18, %s1909_s18 }
  0x12   : > { %p1900_p8 = pneg %p2115_p7 }
  0x13   : > { %p1919_p0 = por %p1918_p13, %p1917_p12 }
  0x14   : > { %p1912_p10 = pnand %p1910_p9, %p1900_p8 }
  0x16   : > { %p1913_p11 = pneg %p1912_p10 }
  0x18   : > { %p1920_p2 = pnand %p1919_p0, %p1913_p11 }
  0x1a   : > { %1923 = shalt.err (!%p1920_p2)
}
  0x1b   : > { %s2547_s19 = smov 128   ;;  %s2549_s20 = smov 8  }
  0x1c   : > { %s2558_s7 = sld [smem:[#allocation11_spill]]  ;;  %p55_p3 = scmp.eq.s32.totalorder %s54_s17, 0 }
  0x1d   : > { %p64_p6 = scmp.ne.s32.totalorder %s2018_s29, %s2014_s28  ;;  %p65_p8 = scmp.eq.s32.totalorder %s2022_s30, 0 }
  0x1e   : > { %p1859_p9 = scmp.lt.s32.totalorder %s2022_s30, 2  ;;  %s285_s24 = sand.u32 1, %s2018_s29  }
  0x1f   : > { %s2140_s23 = scalar_select %p55_p3, %s2018_s29, %s57_s16  }
  0x20   : > { %p66_p10 = por %p65_p8, %p64_p6  ;;  %s1494_s25 = sshll.u32 %s285_s24, 6 }
  0x21   : > { %s1536_s26 = sshll.u32 %s2022_s30, 10  ;;  %s2559_s1 = sld [smem:[#allocation10_spill]] }
  0x22   : > { %1850 = dma.hbm_to_vmem [thread:$0]  (!%p2115_p7), %s2558_s7, 512, %s263_s13, [#allocation5], %s2547_s19, %s2547_s19, %s2549_s20  }
  0x23   : > { %s289_s18 = scalar_lea.vmem [#allocation2], %s1494_s25  ;;  %p2151_p7 = pnand %p1859_p9, %p66_p10 }
  0x24   : > { %s296_s13 = sshll.u32 %s289_s18, 4  ;;  %s2158_s22 = scalar_lea.hbm %s2540_s2, %s1536_s26  ;;  %s2149_s13 = int_to_ptr.vmem [resolvable:$true] %s296_s13 }
  0x25   : > { %s310_s27 = scalar_lea.vmem [#allocation4], %s1494_s25  ;;  %s2162_s19 = scalar_lea.sflag [#allocation3], %s285_s24 }
  0x26   : > { %s2160_s12 = sshll.u32 %s310_s27, 4  ;;  %p1926_p12 = pneg %p2151_p7  ;;  %s2193_s12 = int_to_ptr.vmem [resolvable:$true] %s2160_s12 }
  0x27   : > { %s2147_s14 = scalar_lea.hbm %s2559_s1, %s1536_s26  ;;  %s1929_s16 = scalar_lea.hbm %s2559_s1, 2048 }
  0x28   : > { %s1924_s20 = scalar_lea.hbm %s2147_s14, 1024  ;;  %p1930_p2 = scmp.lt.s32.totalorder %s2147_s14, %s2559_s1 }
  0x29   : > { %p1925_p11 = scmp.ne.s32.totalorder %s2147_s14, %s1924_s20  ;;  %p1931_p3 = scmp.lt.s32.totalorder %s1929_s16, %s1924_s20 }
  0x2b   : > { %p1927_p13 = pnand %p1926_p12, %p1925_p11  ;;  %p1932_p6 = por %p1931_p3, %p1930_p2 }
  0x2d   : > { %p1928_p0 = pneg %p1927_p13 }
  0x2f   : > { %p1933_p8 = pnand %p1932_p6, %p1928_p0 }
  0x31   : > { %1936 = shalt.err (!%p1933_p8)
}
  0x32   : > { %s1937_s24 = scalar_lea.vmem %s2149_s13, 1024  ;;  %s2027_s7 = smov [#allocation2]  }
  0x33   : > { %p1938_p9 = scmp.ne.s32.totalorder %s2149_s13, %s1937_s24  ;;  %s1942_s25 = sshll.u32 %s2027_s7, 4  ;;  %s1943_s25 = int_to_ptr.vmem [resolvable:$false] %s1942_s25 }
  0x34   : > { %s1944_s27 = scalar_lea.vmem %s1943_s25, 2048  ;;  %p1945_p13 = scmp.lt.s32.totalorder %s2149_s13, %s1943_s25 }
  0x35   : > { %p1940_p10 = pnand %p1938_p9, %p1926_p12  ;;  %p1946_p1 = scmp.lt.s32.totalorder %s1944_s27, %s1937_s24 }
  0x37   : > { %p1941_p11 = pneg %p1940_p10  ;;  %p1947_p4 = por %p1946_p1, %p1945_p13 }
  0x39   : > { %p1948_p2 = pnand %p1947_p4, %p1941_p11 }
  0x3b   : > { %1951 = shalt.err (!%p1948_p2)
}
  0x3c   : > { %s2561_s20 = smov 8   ;;  %s2562_s18 = smov 128  }
  0x3d   : > { %1854 = dma.hbm_to_vmem [thread:$0]  (!%p2151_p7), %s2147_s14, 1024, %s2149_s13, %s2162_s19, %s2562_s18, %s2562_s18, %s2561_s20  }
  0x3e   : > { %s306_s16 = sand.u32 1, %s2022_s30   ;;  %s1952_s26 = scalar_lea.hbm %s2158_s22, 1024 }
  0x3f   : > { %s307_s21 = scalar_lea.sflag [#allocation5], %s306_s16  ;;  %p1953_p1 = scmp.ne.s32.totalorder %s2158_s22, %s1952_s26 }
  0x40   : > { %s1957_s25 = scalar_lea.hbm %s2540_s2, 2048  ;;  %p1958_p3 = scmp.lt.s32.totalorder %s2158_s22, %s2540_s2 }
  0x41   : > { %p1955_p4 = pnand %p1953_p1, %p1926_p12  ;;  %p1959_p6 = scmp.lt.s32.totalorder %s1957_s25, %s1952_s26 }
  0x43   : > { %p1956_p0 = pneg %p1955_p4  ;;  %p1960_p8 = por %p1959_p6, %p1958_p3 }
  0x45   : > { %p1961_p9 = pnand %p1960_p8, %p1956_p0 }
  0x47   : > { %1964 = shalt.err (!%p1961_p9)
}
  0x48   : > { %s1965_s30 = scalar_lea.vmem %s2193_s12, 1024  ;;  %s2028_s19 = smov [#allocation4]  }
  0x49   : > { %p1966_p10 = scmp.ne.s32.totalorder %s2193_s12, %s1965_s30  ;;  %s1970_s14 = sshll.u32 %s2028_s19, 4  ;;  %s1971_s14 = int_to_ptr.vmem [resolvable:$false] %s1970_s14 }
  0x4a   : > { %s1972_s13 = scalar_lea.vmem %s1971_s14, 2048  ;;  %p1973_p2 = scmp.lt.s32.totalorder %s2193_s12, %s1971_s14 }
  0x4b   : > { %p1968_p11 = pnand %p1966_p10, %p1926_p12  ;;  %p1974_p1 = scmp.lt.s32.totalorder %s1972_s13, %s1965_s30 }
  0x4d   : > { %p1969_p13 = pneg %p1968_p11  ;;  %p1975_p4 = por %p1974_p1, %p1973_p2 }
  0x4f   : > { %p1976_p3 = pnand %p1975_p4, %p1969_p13 }
  0x51   : > { %1979 = shalt.err (!%p1976_p3)
}
  0x52   : > { %1857 = dma.hbm_to_vmem [thread:$0]  (!%p2151_p7), %s2158_s22, 1024, %s2193_s12, %s307_s21, %s2562_s18, %s2562_s18, %s2561_s20  }
  0x53   : > { %329 = sbr.rel (%p2107_p5) target bundleno = 884 (0x374), region = 52  ;;  %s331_s1 = sand.u32 (!%p2107_p5), 1, %s2014_s28  }
  0x54   : > { %s1501_s16 = sshll.u32 (!%p2107_p5), %s331_s1, 6  ;;  %s332_s26 = scalar_lea.sflag (!%p2107_p5), [#allocation3], %s331_s1 }
  0x55   : > { %s2224_s24 = scalar_lea.vmem (!%p2107_p5), [#allocation2], %s1501_s16  ;;  %p2563_p12 = scmp.ne.s32.totalorder (!%p2107_p5), %s2555_s10, 0 }
  0x58   : > { %1997 = dma.done.wait (%p2563_p12), %s332_s26, 1024  }
  0x59   : > { %1999 = vsyncadd (%p2563_p12), %s332_s26, 4294966272  ;;  %s340_s17 = sand.u32 1, %s2095_s9   ;;  %s2231_s22 = scalar_lea.vmem [#allocation4], %s1501_s16 }
  0x5a   : > { %s341_s7 = scalar_lea.sflag [#allocation5], %s340_s17 }
  0x5b   : > { %2001 = dma.done.wait (%p2563_p12), %s341_s7, 1024  }
  0x5c   : > { %2003 = vsyncadd (%p2563_p12), %s341_s7, 4294966272  ;;  %p2564_p5 = scmp.eq.s32.totalorder %s2095_s9, 0 }
  0x5e   : > { %2005 = dma.done.wait (%p2564_p5), [#allocation5], 512   ;;  %p2565_p7 = pmov %p2564_p5 }
  0x5f   : > { %s1504_s11 = sshll.u32 %s2095_s9, 3  ;;  %v2248_v0 = vld [vmem:[%s2541_s3 + $0x78] sm:$0xff]  ;;  %v2253_v1 = vld [vmem:[%s2541_s3 + $0x70] sm:$0xff]  ;;  %v2259_v2 = vld [vmem:[%s2541_s3 + $0x68] sm:$0xff]  ;;  %s2029_s9 = smov 96   ;;  %vm555_vm0 = vcmask 261120  }
  0x60   : > { %2007 = vsyncadd (%p2565_p7), [#allocation5], 4294966784  ;;  %p393_p0 = scmp.lt.s32.totalorder %s1504_s11, 15  ;;  %1647 = vmatprep.subr.mxu0 %v2248_v0  ;;  %739 = vrot.lane.b32.xlu0 %v2248_v0, %s2029_s9  ;;  %v2276_v3 = vld [vmem:[%s2541_s3 + $0x60] sm:$0xff]  ;;  %v2286_v5 = vld [vmem:[%s2541_s3 + $0x58] sm:$0xff]  ;;  %s2030_s13 = smov 64  }
  0x61   : > { %1648 = vmatpush3.msra.mxu0 %v2248_v0  ;;  %735 = vrot.lane.b32.xlu1 %v2259_v2, %s2029_s9  ;;  %v2295_v6 = vld [vmem:[%s2541_s3 + $0x50] sm:$0xff]  ;;  %v554_v7 = vld [vmem:[%s2543_s5 + $0x18] sm:$0xff]  ;;  %v2307_v8 = vld [vmem:[%s2541_s3 + $0x48] sm:$0xff]  ;;  %vm1343_vm1 = vcmask 523264  }
  0x62   : > { %s2571_s11 = smov (!%p393_p0, %s1504_s11), 15  ;;  %1649 = vmatprep.subr.mxu0 %v2253_v1  ;;  %1691 = vmatprep.subr.mxu1 %v554_v7  ;;  %v553_v9 = vld [vmem:[%s2543_s5 + $0x10] sm:$0xff]  ;;  %v2319_v10 = vld [vmem:[%s2541_s3 + $0x40] sm:$0xff]  ;;  %v414_v11 = vld [vmem:[%s2541_s3 + $0x38] sm:$0xff] }
  0x63   : > { %s1505_s12 = sshll.u32 %s2571_s11, 3  ;;  %1650 = vmatpush3.msra.mxu0 %v2253_v1  ;;  %1692 = vmatpush3.msra.mxu1 %v554_v7  ;;  %v413_v12 = vld [vmem:[%s2541_s3 + $0x30] sm:$0xff]  ;;  %v412_v13 = vld [vmem:[%s2541_s3 + $0x28] sm:$0xff]  ;;  %v411_v14 = vld [vmem:[%s2541_s3 + $0x20] sm:$0xff]  ;;  %s1538_s25 = sshll.u32 %s2571_s11, 4 }
  0x64   : > { %s2267_s14 = scalar_lea.vmem %s2538_s0, %s1505_s12  ;;  %1651 = vmatprep.subr.mxu0 %v2259_v2  ;;  %737 = vrot.lane.b32.xlu0 %v2253_v1, %s2029_s9  ;;  %v410_v15 = vld [vmem:[%s2541_s3 + $0x18] sm:$0xff]  ;;  %v409_v16 = vld [vmem:[%s2541_s3 + $0x10] sm:$0xff]  ;;  %v408_v17 = vld [vmem:[%s2541_s3 + $0x8] sm:$0xff]  ;;  %s2483_s19 = scalar_lea.vmem %s2546_s8, %s1538_s25 }
  0x65   : > { %v424_v4 = vld [vmem:[%s2267_s14] sm:$0xff]  ;;  %1652 = vmatpush3.msra.mxu0 %v2259_v2  ;;  %733 = vrot.lane.b32.xlu1 %v2276_v3, %s2029_s9  ;;  %v425_v19 = vld [vmem:[%s2267_s14 + $0x8] sm:$0xff]  ;;  %v426_v20 = vld [vmem:[%s2267_s14 + $0x10] sm:$0xff] }
  0x66   : > { %1679 = vmatprep.mubr.f32.mxu0 %v424_v4  ;;  %1653 = vmatprep.subr.mxu0 %v2276_v3  ;;  %v407_v18 = vld [vmem:[%s2541_s3] sm:$0xff]  ;;  %v427_v21 = vld [vmem:[%s2267_s14 + $0x18] sm:$0xff]  ;;  %v429_v23 = vld [vmem:[%s2267_s14 + $0x28] sm:$0xff] }
  0x67   : > { %1654 = vmatpush3.msra.mxu0 %v2276_v3  ;;  %1693 = vmatprep.subr.mxu1 %v553_v9  ;;  %v428_v22 = vld [vmem:[%s2267_s14 + $0x20] sm:$0xff]  ;;  %v430_v24 = vld [vmem:[%s2267_s14 + $0x30] sm:$0xff]  ;;  %v431_v25 = vld [vmem:[%s2267_s14 + $0x38] sm:$0xff] }
  0x68   : > { %1655 = vmatprep.subr.mxu0 %v2286_v5  ;;  %731 = vrot.lane.b32.xlu0 %v2286_v5, %s2029_s9  ;;  %v1509_v26 = vld [vmem:[%s2542_s4] ss:$0 sm:$0xff]  ;;  %v552_v27 = vld [vmem:[%s2543_s5 + $0x8] sm:$0xff] }
  0x69   : > { %1656 = vmatpush3.msra.mxu0 %v2286_v5  ;;  %729 = vrot.lane.b32.xlu1 %v2295_v6, %s2029_s9  ;;  %v551_v28 = vld [vmem:[%s2543_s5] sm:$0xff] }
  0x6a   : > { %1657 = vmatprep.subr.mxu0 %v2295_v6  ;;  %1694 = vmatpush3.msra.mxu1 %v553_v9 }
  0x6b   : > { %1658 = vmatpush3.msra.mxu0 %v2295_v6  ;;  %1695 = vmatprep.subr.mxu1 %v552_v27 }
  0x6c   : > { %1659 = vmatprep.subr.mxu0 %v2307_v8  ;;  %727 = vrot.lane.b32.xlu0 %v2307_v8, %s2029_s9 }
  0x6d   : > { %1660 = vmatpush3.msra.mxu0 %v2307_v8  ;;  %725 = vrot.lane.b32.xlu1 %v2319_v10, %s2029_s9 }
  0x6e   : > { %1661 = vmatprep.subr.mxu0 %v2319_v10  ;;  %1696 = vmatpush3.msra.mxu1 %v552_v27 }
  0x6f   : > { %1662 = vmatpush3.msra.mxu0 %v2319_v10  ;;  %1697 = vmatprep.subr.mxu1 %v551_v28 }
  0x70   : > { %1663 = vmatprep.subr.mxu0 %v414_v11  ;;  %723 = vrot.lane.b32.xlu0 %v414_v11, %s2029_s9 }
  0x71   : > { %1664 = vmatpush3.msra.mxu0 %v414_v11  ;;  %721 = vrot.lane.b32.xlu1 %v413_v12, %s2029_s9 }
  0x72   : > { %1665 = vmatprep.subr.mxu0 %v413_v12  ;;  %1698 = vmatpush3.msra.mxu1 %v551_v28 }
  0x73   : > { %1666 = vmatpush3.msra.mxu0 %v413_v12 }
  0x74   : > { %1667 = vmatprep.subr.mxu0 %v412_v13  ;;  %719 = vrot.lane.b32.xlu0 %v412_v13, %s2029_s9 }
  0x75   : > { %1668 = vmatpush3.msra.mxu0 %v412_v13  ;;  %717 = vrot.lane.b32.xlu1 %v411_v14, %s2029_s9 }
  0x76   : > { %1669 = vmatprep.subr.mxu0 %v411_v14 }
  0x77   : > { %1670 = vmatpush3.msra.mxu0 %v411_v14 }
  0x78   : > { %1671 = vmatprep.subr.mxu0 %v410_v15  ;;  %715 = vrot.lane.b32.xlu0 %v410_v15, %s2029_s9 }
  0x79   : > { %1672 = vmatpush3.msra.mxu0 %v410_v15  ;;  %713 = vrot.lane.b32.xlu1 %v409_v16, %s2029_s9 }
  0x7a   : > { %1673 = vmatprep.subr.mxu0 %v409_v16 }
  0x7b   : > { %1674 = vmatpush3.msra.mxu0 %v409_v16 }
  0x7c   : > { %1675 = vmatprep.subr.mxu0 %v408_v17  ;;  %711 = vrot.lane.b32.xlu0 %v408_v17, %s2029_s9 }
  0x7d   : > { %1676 = vmatpush3.msra.mxu0 %v408_v17  ;;  %709 = vrot.lane.b32.xlu1 %v407_v18, %s2029_s9 }
  0x7e   : > { %1677 = vmatprep.subr.mxu0 %v407_v18 }
  0x7f   : > { %1678 = vmatpush3.msra.mxu0 %v407_v18 }
  0x80   : > { %1680 = vmatmul.mubr.f32.vlgmr.msra.gmra.mxu0 %v425_v19  ;;  %1044 = vrot.lane.b32.xlu0 %v2248_v0, %s2030_s13  ;;  %v691_v19 = vld [vmem:[%s2224_s24 + $0x30] sm:$0xff] }
  0x81   : > { %1682 = vmatprep.mubr.f32.mxu0 %v426_v20  ;;  %1042 = vrot.lane.b32.xlu1 %v2253_v1, %s2030_s13 }
  0x84   : > { %1683 = vmatmul.mubr.f32.gmra.mxu0 %v427_v21  ;;  %1040 = vrot.lane.b32.xlu0 %v2259_v2, %s2030_s13  ;;  %v692_v21 = vld [vmem:[%s2224_s24 + $0x38] sm:$0xff] }
  0x85   : > { %1685 = vmatprep.mubr.f32.mxu0 %v428_v22  ;;  %1038 = vrot.lane.b32.xlu1 %v2276_v3, %s2030_s13  ;;  %v685_v3 = vld [vmem:[%s2224_s24] sm:$0xff] }
  0x88   : > { %1686 = vmatmul.mubr.f32.gmra.mxu0 %v429_v23  ;;  %1036 = vrot.lane.b32.xlu0 %v2286_v5, %s2030_s13  ;;  %v1006_v23 = vld [vmem:[%s2231_s22] sm:$0xff] }
  0x89   : > { %1688 = vmatprep.mubr.f32.mxu0 %v430_v24  ;;  %1034 = vrot.lane.b32.xlu1 %v2295_v6, %s2030_s13 }
  0x8c   : > { %1689 = vmatmul.mubr.f32.gmra.mxu0 %v431_v25  ;;  %1032 = vrot.lane.b32.xlu0 %v2307_v8, %s2030_s13 }
  0x8d   : > { %1030 = vrot.lane.b32.xlu1 %v2319_v10, %s2030_s13 }
  0x90   : > { %1028 = vrot.lane.b32.xlu0 %v414_v11, %s2030_s13  ;;  %v686_v11 = vld [vmem:[%s2224_s24 + $0x8] sm:$0xff] }
  0x91   : > { %1026 = vrot.lane.b32.xlu1 %v413_v12, %s2030_s13 }
  0x94   : > { %1024 = vrot.lane.b32.xlu0 %v412_v13, %s2030_s13  ;;  %v687_v13 = vld [vmem:[%s2224_s24 + $0x10] sm:$0xff] }
  0x95   : > { %1022 = vrot.lane.b32.xlu1 %v411_v14, %s2030_s13  ;;  %v688_v14 = vld [vmem:[%s2224_s24 + $0x18] sm:$0xff] }
  0x98   : > { %1020 = vrot.lane.b32.xlu0 %v410_v15, %s2030_s13 }
  0x99   : > { %1018 = vrot.lane.b32.xlu1 %v409_v16, %s2030_s13  ;;  %v689_v16 = vld [vmem:[%s2224_s24 + $0x20] sm:$0xff] }
  0x9c   : > { %1016 = vrot.lane.b32.xlu0 %v408_v17, %s2030_s13 }
  0x9d   : > { %1014 = vrot.lane.b32.xlu1 %v407_v18, %s2030_s13  ;;  %v690_v18 = vld [vmem:[%s2224_s24 + $0x28] sm:$0xff] }
  0xa0   : > { %757 = vrot.lane.b32.xlu0 %v1509_v26, %s2029_s9 }
  0xa1   : > { %1062 = vrot.lane.b32.xlu1 %v1509_v26, %s2030_s13 }
  0xd2   : > { %v740_v29 = vpop.permute.xlu0 %739 }
  0xd3   : > { %1711 = vmatprep.subr.mxu1 %v740_v29  ;;  %v736_v30 = vpop.permute.xlu1 %735 }
  0xd6   : > { %v738_v31 = vpop.permute.xlu0 %737 }
  0xd7   : > { %v734_v32 = vpop.permute.xlu1 %733 }
  0xda   : > { %v732_v33 = vpop.permute.xlu0 %731 }
  0xdb   : > { %v730_v34 = vpop.permute.xlu1 %729 }
  0xde   : > { %v728_v35 = vpop.permute.xlu0 %727 }
  0xdf   : > { %v726_v36 = vpop.permute.xlu1 %725 }
  0xe2   : > { %v724_v38 = vpop.permute.xlu0 %723 }
  0xe3   : > { %v722_v42 = vpop.permute.xlu1 %721 }
  0xe6   : > { %v720_v49 = vpop.permute.xlu0 %719 }
  0xe7   : > { %v718_v54 = vpop.permute.xlu1 %717 }
  0xea   : > { %v716_v61 = vpop.permute.xlu0 %715 }
  0xeb   : > { %v714_v0 = vpop.permute.xlu1 %713 }
  0xee   : > { %v712_v4 = vpop.permute.xlu0 %711 }
  0xef   : > { %v710_v5 = vpop.permute.xlu1 %709 }
  0xf2   : > { %v1045_v6 = vpop.permute.xlu0 %1044 }
  0xf3   : > { %v1043_v7 = vpop.permute.xlu1 %1042 }
  0xf6   : > { %v1041_v8 = vpop.permute.xlu0 %1040 }
  0xf7   : > { %v1039_v9 = vpop.permute.xlu1 %1038 }
  0xfa   : > { %v1037_v10 = vpop.permute.xlu0 %1036 }
  0xfb   : > { %v1035_v12 = vpop.permute.xlu1 %1034 }
  0xfe   : > { %v1033_v15 = vpop.permute.xlu0 %1032 }
  0xff   : > { %v1031_v17 = vpop.permute.xlu1 %1030 }
 0x102   : > { %v1029_v20 = vpop.permute.xlu0 %1028 }
 0x103   : > { %v1027_v22 = vpop.permute.xlu1 %1026 }
 0x106   : > { %v1025_v24 = vpop.permute.xlu0 %1024 }
 0x107   : > { %v1023_v25 = vpop.permute.xlu1 %1022 }
 0x10b   : > { %v1019_v27 = vpop.permute.xlu1 %1018 }
 0x140   : > { %v1681_v37 = vpop.f32.mrf.mxu0 }
 0x141   : > { %v510_v39 = vadd.f32 %v1681_v37, %v1509_v26  ;;  %v876_v37 = vld [vmem:[%s2544_s6 + $0x18] sm:$0xff] }
 0x142   : > { %v504_v40 = vpop.f32.mrf.mxu0  ;;  %1755 = vmatprep.subr.mxu0 %v876_v37 }
 0x143   : > { %v505_v41 = vadd.f32 %v1509_v26, %v504_v40  ;;  %v544_v46 = vmax.f32 %v510_v39, 0.0  ;;  %1756 = vmatpush3.msra.mxu0 %v876_v37  ;;  %v874_v39 = vld [vmem:[%s2544_s6 + $0x8] sm:$0xff]  ;;  %v873_v40 = vld [vmem:[%s2544_s6] sm:$0xff] }
 0x144   : > { %v1684_v43 = vpop.f32.mrf.mxu0 }
 0x145   : > { %v543_v44 = vmax.f32 %v505_v41, 0.0  ;;  %v520_v45 = vadd.f32 %v1684_v43, %v1509_v26  ;;  %v1181_v41 = vld [vmem:[#allocation6 + $0x18] sm:$0xff] }
 0x146   : > { %v514_v47 = vpop.f32.mrf.mxu0 }
 0x147   : > { %1699 = vmatprep.mubr.msk.f32.mxu1 %vm555_vm0, %v543_v44  ;;  %v515_v48 = vadd.f32 %v1509_v26, %v514_v47  ;;  %v546_v50 = vmax.f32 %v520_v45, 0.0 }
 0x148   : > { %1700 = vmatmul.mubr.msk.f32.vlgmr.msra.gmra.mxu1 %vm555_vm0, %v544_v46  ;;  %v1687_v51 = vpop.f32.mrf.mxu0 }
 0x149   : > { %1712 = vmatpush3.msra.mxu1 %v740_v29  ;;  %v545_v52 = vmax.f32 %v515_v48, 0.0  ;;  %v530_v53 = vadd.f32 %v1687_v51, %v1509_v26  ;;  %v1015_v29 = vpop.permute.xlu1 %1014 }
 0x14a   : > { %1713 = vmatprep.subr.mxu1 %v738_v31  ;;  %v524_v55 = vpop.f32.mrf.mxu0 }
 0x14b   : > { %1714 = vmatpush3.msra.mxu1 %v738_v31  ;;  %v525_v56 = vadd.f32 %v1509_v26, %v524_v55  ;;  %1702 = vmatprep.mubr.msk.f32.mxu1 %vm555_vm0, %v545_v52  ;;  %v548_v57 = vmax.f32 %v530_v53, 0.0  ;;  %v1008_v31 = vld [vmem:[%s2231_s22 + $0x10] sm:$0xff] }
 0x14c   : > { %1715 = vmatprep.subr.mxu1 %v736_v30  ;;  %v1690_v58 = vpop.f32.mrf.mxu0  ;;  %1703 = vmatmul.mubr.msk.f32.gmra.mxu1 %vm555_vm0, %v546_v50 }
 0x14d   : > { %1716 = vmatpush3.msra.mxu1 %v736_v30  ;;  %v547_v59 = vmax.f32 %v525_v56, 0.0  ;;  %v540_v60 = vadd.f32 %v1690_v58, %v1509_v26  ;;  %v1007_v30 = vld [vmem:[%s2231_s22 + $0x8] sm:$0xff] }
 0x14e   : > { %1717 = vmatprep.subr.mxu1 %v734_v32  ;;  %v534_v62 = vpop.f32.mrf.mxu0 }
 0x14f   : > { %1718 = vmatpush3.msra.mxu1 %v734_v32  ;;  %v535_v63 = vadd.f32 %v1509_v26, %v534_v62  ;;  %1705 = vmatprep.mubr.msk.f32.mxu1 %vm555_vm0, %v547_v59  ;;  %v550_v1 = vmax.f32 %v540_v60, 0.0  ;;  %v1021_v26 = vpop.permute.xlu0 %1020  ;;  %v1009_v32 = vld [vmem:[%s2231_s22 + $0x18] sm:$0xff] }
 0x150   : > { %1719 = vmatprep.subr.mxu1 %v732_v33  ;;  %1706 = vmatmul.mubr.msk.f32.gmra.mxu1 %vm555_vm0, %v548_v57 }
 0x151   : > { %1720 = vmatpush3.msra.mxu1 %v732_v33  ;;  %v549_v2 = vmax.f32 %v535_v63, 0.0  ;;  %v1010_v33 = vld [vmem:[%s2231_s22 + $0x20] sm:$0xff] }
 0x152   : > { %1721 = vmatprep.subr.mxu1 %v730_v34 }
 0x153   : > { %1722 = vmatpush3.msra.mxu1 %v730_v34  ;;  %1708 = vmatprep.mubr.msk.f32.mxu1 %vm555_vm0, %v549_v2  ;;  %v1017_v28 = vpop.permute.xlu0 %1016  ;;  %v1011_v34 = vld [vmem:[%s2231_s22 + $0x28] sm:$0xff] }
 0x154   : > { %1723 = vmatprep.subr.mxu1 %v728_v35  ;;  %1709 = vmatmul.mubr.msk.f32.gmra.mxu1 %vm555_vm0, %v550_v1 }
 0x155   : > { %1724 = vmatpush3.msra.mxu1 %v728_v35  ;;  %1743 = vmatprep.mubr.f32.mxu1 %v685_v3  ;;  %v1012_v35 = vld [vmem:[%s2231_s22 + $0x30] sm:$0xff] }
 0x156   : > { %1725 = vmatprep.subr.mxu1 %v726_v36 }
 0x157   : > { %1726 = vmatpush3.msra.mxu1 %v726_v36  ;;  %v1013_v36 = vld [vmem:[%s2231_s22 + $0x38] sm:$0xff]  ;;  %v758_v50 = vpop.permute.xlu0 %757 }
 0x158   : > { %1727 = vmatprep.subr.mxu1 %v724_v38 }
 0x159   : > { %1728 = vmatpush3.msra.mxu1 %v724_v38  ;;  %v875_v38 = vld [vmem:[%s2544_s6 + $0x10] sm:$0xff] }
 0x15a   : > { %1729 = vmatprep.subr.mxu1 %v722_v42  ;;  %1757 = vmatprep.subr.mxu0 %v875_v38 }
 0x15b   : > { %1730 = vmatpush3.msra.mxu1 %v722_v42  ;;  %1758 = vmatpush3.msra.mxu0 %v875_v38 }
 0x15c   : > { %1731 = vmatprep.subr.mxu1 %v720_v49  ;;  %1759 = vmatprep.subr.mxu0 %v874_v39 }
 0x15d   : > { %1732 = vmatpush3.msra.mxu1 %v720_v49  ;;  %1760 = vmatpush3.msra.mxu0 %v874_v39 }
 0x15e   : > { %1733 = vmatprep.subr.mxu1 %v718_v54  ;;  %1761 = vmatprep.subr.mxu0 %v873_v40 }
 0x15f   : > { %1734 = vmatpush3.msra.mxu1 %v718_v54  ;;  %1762 = vmatpush3.msra.mxu0 %v873_v40 }
 0x160   : > { %1735 = vmatprep.subr.mxu1 %v716_v61  ;;  %1819 = vmatprep.subr.mxu0 %v1181_v41 }
 0x161   : > { %1736 = vmatpush3.msra.mxu1 %v716_v61  ;;  %v1180_v61 = vld [vmem:[#allocation6 + $0x10] sm:$0xff] }
 0x162   : > { %1737 = vmatprep.subr.mxu1 %v714_v0 }
 0x163   : > { %1738 = vmatpush3.msra.mxu1 %v714_v0  ;;  %v1179_v0 = vld [vmem:[#allocation6 + $0x8] sm:$0xff] }
 0x164   : > { %1739 = vmatprep.subr.mxu1 %v712_v4 }
 0x165   : > { %1740 = vmatpush3.msra.mxu1 %v712_v4 }
 0x166   : > { %1741 = vmatprep.subr.mxu1 %v710_v5 }
 0x167   : > { %1742 = vmatpush3.msra.mxu1 %v710_v5  ;;  %v1178_v5 = vld [vmem:[#allocation6] sm:$0xff] }
 0x168   : > { %1744 = vmatmul.mubr.f32.vlgmr.msra.gmra.mxu1 %v686_v11  ;;  %1775 = vmatprep.subr.mxu1 %v1045_v6 }
 0x169   : > { %1746 = vmatprep.mubr.f32.mxu1 %v687_v13  ;;  %1776 = vmatpush3.msra.mxu1 %v1045_v6 }
 0x16a   : > { %1777 = vmatprep.subr.mxu1 %v1043_v7 }
 0x16b   : > { %1778 = vmatpush3.msra.mxu1 %v1043_v7 }
 0x16c   : > { %1747 = vmatmul.mubr.f32.gmra.mxu1 %v688_v14  ;;  %1779 = vmatprep.subr.mxu1 %v1041_v8  ;;  %v1063_v14 = vpop.permute.xlu1 %1062 }
 0x16d   : > { %1749 = vmatprep.mubr.f32.mxu1 %v689_v16  ;;  %1780 = vmatpush3.msra.mxu1 %v1041_v8 }
 0x16e   : > { %1781 = vmatprep.subr.mxu1 %v1039_v9 }
 0x16f   : > { %1782 = vmatpush3.msra.mxu1 %v1039_v9 }
 0x170   : > { %1750 = vmatmul.mubr.f32.gmra.mxu1 %v690_v18  ;;  %1783 = vmatprep.subr.mxu1 %v1037_v10 }
 0x171   : > { %1752 = vmatprep.mubr.f32.mxu1 %v691_v19  ;;  %1784 = vmatpush3.msra.mxu1 %v1037_v10 }
 0x172   : > { %1785 = vmatprep.subr.mxu1 %v1035_v12 }
 0x173   : > { %1786 = vmatpush3.msra.mxu1 %v1035_v12 }
 0x174   : > { %1753 = vmatmul.mubr.f32.gmra.mxu1 %v692_v21  ;;  %1787 = vmatprep.subr.mxu1 %v1033_v15 }
 0x175   : > { %1788 = vmatpush3.msra.mxu1 %v1033_v15  ;;  %1807 = vmatprep.mubr.f32.mxu1 %v1006_v23 }
 0x176   : > { %1789 = vmatprep.subr.mxu1 %v1031_v17 }
 0x177   : > { %1790 = vmatpush3.msra.mxu1 %v1031_v17 }
 0x178   : > { %1791 = vmatprep.subr.mxu1 %v1029_v20 }
 0x179   : > { %1792 = vmatpush3.msra.mxu1 %v1029_v20 }
 0x17a   : > { %1793 = vmatprep.subr.mxu1 %v1027_v22 }
 0x17b   : > { %1794 = vmatpush3.msra.mxu1 %v1027_v22 }
 0x17c   : > { %1795 = vmatprep.subr.mxu1 %v1025_v24 }
 0x17d   : > { %1796 = vmatpush3.msra.mxu1 %v1025_v24 }
 0x17e   : > { %1797 = vmatprep.subr.mxu1 %v1023_v25 }
 0x17f   : > { %1798 = vmatpush3.msra.mxu1 %v1023_v25 }
 0x180   : > { %1799 = vmatprep.subr.mxu1 %v1021_v26 }
 0x181   : > { %1800 = vmatpush3.msra.mxu1 %v1021_v26 }
 0x182   : > { %1801 = vmatprep.subr.mxu1 %v1019_v27 }
 0x183   : > { %1802 = vmatpush3.msra.mxu1 %v1019_v27 }
 0x184   : > { %1803 = vmatprep.subr.mxu1 %v1017_v28 }
 0x185   : > { %1804 = vmatpush3.msra.mxu1 %v1017_v28 }
 0x186   : > { %1805 = vmatprep.subr.mxu1 %v1015_v29 }
 0x187   : > { %1806 = vmatpush3.msra.mxu1 %v1015_v29 }
 0x188   : > { %1808 = vmatmul.mubr.f32.vlgmr.msra.gmra.mxu1 %v1007_v30 }
 0x189   : > { %1810 = vmatprep.mubr.f32.mxu1 %v1008_v31 }
 0x18c   : > { %1811 = vmatmul.mubr.f32.gmra.mxu1 %v1009_v32 }
 0x18d   : > { %1813 = vmatprep.mubr.f32.mxu1 %v1010_v33 }
 0x190   : > { %1814 = vmatmul.mubr.f32.gmra.mxu1 %v1011_v34 }
 0x191   : > { %1816 = vmatprep.mubr.f32.mxu1 %v1012_v35 }
 0x194   : > { %1817 = vmatmul.mubr.f32.gmra.mxu1 %v1013_v36 }
 0x208   : > { %v2439_v42 = vpop.f32.mrf.mxu1 }
 0x20a   : > { %v2441_v43 = vpop.f32.mrf.mxu1 }
 0x20c   : > { %v2443_v44 = vpop.f32.mrf.mxu1 }
 0x20e   : > { %v2445_v45 = vpop.f32.mrf.mxu1 }
 0x210   : > { %v2447_v46 = vpop.f32.mrf.mxu1 }
 0x212   : > { %v2449_v47 = vpop.f32.mrf.mxu1 }
 0x214   : > { %v2451_v48 = vpop.f32.mrf.mxu1 }
 0x216   : > { %v2453_v49 = vpop.f32.mrf.mxu1 }
 0x228   : > { %v1745_v51 = vpop.f32.mrf.mxu1 }
 0x229   : > { %v832_v52 = vadd.f32 %v1745_v51, %v758_v50 }
 0x22a   : > { %v826_v53 = vpop.f32.mrf.mxu1 }
 0x22b   : > { %v827_v54 = vadd.f32 %v826_v53, %v758_v50  ;;  %v866_v57 = vmax.f32 %v832_v52, 0.0 }
 0x22c   : > { %v1748_v55 = vpop.f32.mrf.mxu1 }
 0x22d   : > { %v865_v56 = vmax.f32 %v827_v54, 0.0  ;;  %v842_v58 = vadd.f32 %v1748_v55, %v758_v50 }
 0x22e   : > { %v836_v59 = vpop.f32.mrf.mxu1 }
 0x22f   : > { %v837_v60 = vadd.f32 %v836_v59, %v758_v50  ;;  %1763 = vmatprep.mubr.msk.f32.mxu0 %vm555_vm0, %v865_v56  ;;  %v868_v1 = vmax.f32 %v842_v58, 0.0 }
 0x230   : > { %v1751_v62 = vpop.f32.mrf.mxu1  ;;  %1764 = vmatmul.mubr.msk.f32.vlgmr.msra.gmra.mxu0 %vm555_vm0, %v866_v57 }
 0x231   : > { %v867_v63 = vmax.f32 %v837_v60, 0.0  ;;  %1820 = vmatpush3.msra.mxu0 %v1181_v41  ;;  %v852_v2 = vadd.f32 %v1751_v62, %v758_v50 }
 0x232   : > { %v846_v3 = vpop.f32.mrf.mxu1  ;;  %1821 = vmatprep.subr.mxu0 %v1180_v61 }
 0x233   : > { %v847_v4 = vadd.f32 %v846_v3, %v758_v50  ;;  %1766 = vmatprep.mubr.msk.f32.mxu0 %vm555_vm0, %v867_v63  ;;  %1822 = vmatpush3.msra.mxu0 %v1180_v61  ;;  %v870_v8 = vmax.f32 %v852_v2, 0.0 }
 0x234   : > { %v1754_v6 = vpop.f32.mrf.mxu1  ;;  %1767 = vmatmul.mubr.msk.f32.gmra.mxu0 %vm555_vm0, %v868_v1  ;;  %1823 = vmatprep.subr.mxu0 %v1179_v0 }
 0x235   : > { %v869_v7 = vmax.f32 %v847_v4, 0.0  ;;  %1824 = vmatpush3.msra.mxu0 %v1179_v0  ;;  %v862_v9 = vadd.f32 %v1754_v6, %v758_v50 }
 0x236   : > { %v856_v10 = vpop.f32.mrf.mxu1  ;;  %1825 = vmatprep.subr.mxu0 %v1178_v5 }
 0x237   : > { %v857_v11 = vadd.f32 %v856_v10, %v758_v50  ;;  %1769 = vmatprep.mubr.msk.f32.mxu0 %vm555_vm0, %v869_v7  ;;  %1826 = vmatpush3.msra.mxu0 %v1178_v5  ;;  %v872_v13 = vmax.f32 %v862_v9, 0.0 }
 0x238   : > { %1770 = vmatmul.mubr.msk.f32.gmra.mxu0 %vm555_vm0, %v870_v8 }
 0x239   : > { %v871_v12 = vmax.f32 %v857_v11, 0.0 }
 0x23b   : > { %1772 = vmatprep.mubr.msk.f32.mxu0 %vm555_vm0, %v871_v12 }
 0x23c   : > { %1773 = vmatmul.mubr.msk.f32.gmra.mxu0 %vm555_vm0, %v872_v13 }
 0x248   : > { %v1809_v15 = vpop.f32.mrf.mxu1 }
 0x249   : > { %v1137_v16 = vadd.f32 %v1809_v15, %v1063_v14 }
 0x24a   : > { %v1131_v17 = vpop.f32.mrf.mxu1 }
 0x24b   : > { %v1132_v18 = vadd.f32 %v1131_v17, %v1063_v14  ;;  %v1171_v20 = vmax.f32 %v1137_v16, 0.0 }
 0x24c   : > { %v1812_v19 = vpop.f32.mrf.mxu1 }
 0x24d   : > { %v1170_v21 = vmax.f32 %v1132_v18, 0.0  ;;  %v1147_v22 = vadd.f32 %v1812_v19, %v1063_v14 }
 0x24e   : > { %v1141_v23 = vpop.f32.mrf.mxu1 }
 0x24f   : > { %v1142_v24 = vadd.f32 %v1141_v23, %v1063_v14  ;;  %1827 = vmatprep.mubr.msk.f32.mxu0 %vm555_vm0, %v1170_v21  ;;  %v1173_v25 = vmax.f32 %v1147_v22, 0.0 }
 0x250   : > { %v1815_v26 = vpop.f32.mrf.mxu1  ;;  %1828 = vmatmul.mubr.msk.f32.vlgmr.msra.gmra.mxu0 %vm555_vm0, %v1171_v20 }
 0x251   : > { %v1172_v27 = vmax.f32 %v1142_v24, 0.0  ;;  %v1157_v28 = vadd.f32 %v1815_v26, %v1063_v14 }
 0x252   : > { %v1151_v29 = vpop.f32.mrf.mxu1 }
 0x253   : > { %v1152_v30 = vadd.f32 %v1151_v29, %v1063_v14  ;;  %1830 = vmatprep.mubr.msk.f32.mxu0 %vm555_vm0, %v1172_v27  ;;  %v1175_v31 = vmax.f32 %v1157_v28, 0.0 }
 0x254   : > { %v1818_v32 = vpop.f32.mrf.mxu1  ;;  %1831 = vmatmul.mubr.msk.f32.gmra.mxu0 %vm555_vm0, %v1173_v25 }
 0x255   : > { %v1174_v33 = vmax.f32 %v1152_v30, 0.0  ;;  %v1167_v34 = vadd.f32 %v1818_v32, %v1063_v14 }
 0x256   : > { %v1161_v35 = vpop.f32.mrf.mxu1 }
 0x257   : > { %v1162_v36 = vadd.f32 %v1161_v35, %v1063_v14  ;;  %1833 = vmatprep.mubr.msk.f32.mxu0 %vm555_vm0, %v1174_v33  ;;  %v1177_v37 = vmax.f32 %v1167_v34, 0.0 }
 0x258   : > { %1834 = vmatmul.mubr.msk.f32.gmra.mxu0 %vm555_vm0, %v1175_v31 }
 0x259   : > { %v1176_v38 = vmax.f32 %v1162_v36, 0.0 }
 0x25b   : > { %1836 = vmatprep.mubr.msk.f32.mxu0 %vm555_vm0, %v1176_v38 }
 0x25c   : > { %1837 = vmatmul.mubr.msk.f32.gmra.mxu0 %vm555_vm0, %v1177_v37 }
 0x2f0   : > { %v1765_v39 = vpop.f32.mrf.mxu0 }
 0x2f1   : > { %1321 = vrot.lane.b32.xlu1 %v1765_v39, %s2030_s13 }
 0x2f2   : > { %v967_v40 = vpop.f32.mrf.mxu0 }
 0x2f3   : > { %1319 = vrot.lane.b32.xlu0 %v967_v40, %s2030_s13 }
 0x2f4   : > { %v1768_v41 = vpop.f32.mrf.mxu0 }
 0x2f5   : > { %1325 = vrot.lane.b32.xlu1 %v1768_v41, %s2030_s13 }
 0x2f6   : > { %v977_v50 = vpop.f32.mrf.mxu0 }
 0x2f7   : > { %1323 = vrot.lane.b32.xlu0 %v977_v50, %s2030_s13 }
 0x2f8   : > { %v1771_v51 = vpop.f32.mrf.mxu0 }
 0x2f9   : > { %1329 = vrot.lane.b32.xlu1 %v1771_v51, %s2030_s13 }
 0x2fa   : > { %v987_v52 = vpop.f32.mrf.mxu0 }
 0x2fb   : > { %1327 = vrot.lane.b32.xlu0 %v987_v52, %s2030_s13 }
 0x2fc   : > { %v1774_v53 = vpop.f32.mrf.mxu0 }
 0x2fd   : > { %1333 = vrot.lane.b32.xlu1 %v1774_v53, %s2030_s13 }
 0x2fe   : > { %v997_v54 = vpop.f32.mrf.mxu0 }
 0x2ff   : > { %1331 = vrot.lane.b32.xlu0 %v997_v54, %s2030_s13 }
 0x310   : > { %v1829_v55 = vpop.f32.mrf.mxu0 }
 0x311   : > { %v1353_v56 = vsel %vm1343_vm1, %v1829_v55, 0.0 }
 0x312   : > { %1363 = vst [vmem:[%s2483_s19 + $0x18] sm:$0xff] %v1353_v56  ;;  %v1272_v57 = vpop.f32.mrf.mxu0 }
 0x313   : > { %v1352_v58 = vsel %vm1343_vm1, %v1272_v57, 0.0 }
 0x314   : > { %1361 = vst [vmem:[%s2483_s19 + $0x8] sm:$0xff] %v1352_v58  ;;  %v1832_v59 = vpop.f32.mrf.mxu0 }
 0x315   : > { %v1355_v60 = vsel %vm1343_vm1, %v1832_v59, 0.0 }
 0x316   : > { %1367 = vst [vmem:[%s2483_s19 + $0x38] sm:$0xff] %v1355_v60  ;;  %v1282_v61 = vpop.f32.mrf.mxu0 }
 0x317   : > { %v1354_v62 = vsel %vm1343_vm1, %v1282_v61, 0.0 }
 0x318   : > { %1365 = vst [vmem:[%s2483_s19 + $0x28] sm:$0xff] %v1354_v62  ;;  %v1835_v63 = vpop.f32.mrf.mxu0 }
 0x319   : > { %v1357_v0 = vsel %vm1343_vm1, %v1835_v63, 0.0 }
 0x31a   : > { %1371 = vst [vmem:[%s2483_s19 + $0x58] sm:$0xff] %v1357_v0  ;;  %v1292_v1 = vpop.f32.mrf.mxu0 }
 0x31b   : > { %v1356_v2 = vsel %vm1343_vm1, %v1292_v1, 0.0 }
 0x31c   : > { %1369 = vst [vmem:[%s2483_s19 + $0x48] sm:$0xff] %v1356_v2  ;;  %v1838_v3 = vpop.f32.mrf.mxu0 }
 0x31d   : > { %v1359_v4 = vsel %vm1343_vm1, %v1838_v3, 0.0 }
 0x31e   : > { %1375 = vst [vmem:[%s2483_s19 + $0x78] sm:$0xff] %v1359_v4  ;;  %v1302_v5 = vpop.f32.mrf.mxu0 }
 0x31f   : > { %v1358_v6 = vsel %vm1343_vm1, %v1302_v5, 0.0 }
 0x320   : > { %1373 = vst [vmem:[%s2483_s19 + $0x68] sm:$0xff] %v1358_v6 }
 0x363   : > { %v1322_v7 = vpop.permute.xlu1 %1321 }
 0x364   : > { %v1345_v8 = vsel %vm1343_vm1, %v2439_v42, %v1322_v7 }
 0x365   : > { %1362 = vst [vmem:[%s2483_s19 + $0x10] sm:$0xff] %v1345_v8  ;;  %v1320_v9 = vpop.permute.xlu0 %1319 }
 0x366   : > { %v1344_v10 = vsel %vm1343_vm1, %v2441_v43, %v1320_v9 }
 0x367   : > { %1360 = vst [vmem:[%s2483_s19] sm:$0xff] %v1344_v10  ;;  %v1326_v11 = vpop.permute.xlu1 %1325 }
 0x368   : > { %v1347_v12 = vsel %vm1343_vm1, %v2443_v44, %v1326_v11 }
 0x369   : > { %1366 = vst [vmem:[%s2483_s19 + $0x30] sm:$0xff] %v1347_v12  ;;  %v1324_v13 = vpop.permute.xlu0 %1323 }
 0x36a   : > { %v1346_v14 = vsel %vm1343_vm1, %v2445_v45, %v1324_v13 }
 0x36b   : > { %1364 = vst [vmem:[%s2483_s19 + $0x20] sm:$0xff] %v1346_v14  ;;  %v1330_v42 = vpop.permute.xlu1 %1329 }
 0x36c   : > { %v1349_v15 = vsel %vm1343_vm1, %v2447_v46, %v1330_v42 }
 0x36d   : > { %1370 = vst [vmem:[%s2483_s19 + $0x50] sm:$0xff] %v1349_v15  ;;  %v1328_v16 = vpop.permute.xlu0 %1327 }
 0x36e   : > { %v1348_v43 = vsel %vm1343_vm1, %v2449_v47, %v1328_v16 }
 0x36f   : > { %1368 = vst [vmem:[%s2483_s19 + $0x40] sm:$0xff] %v1348_v43  ;;  %v1334_v17 = vpop.permute.xlu1 %1333 }
 0x370   : > { %v1351_v44 = vsel %vm1343_vm1, %v2451_v48, %v1334_v17 }
 0x371   : > { %1374 = vst [vmem:[%s2483_s19 + $0x70] sm:$0xff] %v1351_v44  ;;  %v1332_v18 = vpop.permute.xlu0 %1331 }
 0x372   : > { %v1350_v45 = vsel %vm1343_vm1, %v2453_v49, %v1332_v18 }
 0x373   : > { %1372 = vst [vmem:[%s2483_s19 + $0x60] sm:$0xff] %v1350_v45 }
 0x374 PF: > { %p21_p6 = scmp.ge.s32.totalorder %s2120_s15, 4   ;;  %s2566_s27 = smov %s2014_s28 }
 0x375   : > { %s2567_s28 = smov %s2018_s29  ;;  %s2568_s29 = smov %s2140_s23 }
 0x376   : > { %s2569_s30 = smov %s2120_s15  ;;  %23 = sbr.rel (!%p21_p6) target bundleno = 8 (0x8), region = 112 }
 0x37b   :  { %1400 = vsyncpa [#allocation3], 1 }
 0x37c   :  { %1402 = vsyncpa [#allocation3 + $0x1], 1 }
 0x37d   :  { %1403 = vsyncpa [#allocation5], 1 }
 0x37e   :  { %1405 = vsyncpa [#allocation5 + $0x1], 1 }

// kernel: mfgcn_forward.3
= control target key start
LH: loop header
LB: loop body
LE: loop exit
PB: predicated region body
PF: predicated region fallthrough
CT: control target
= control target key end

     0   :  { %s2203_s13 = smov 0   ;;  %s2886_s0 = inlined_call_operand.vmem [shape: f32[128,128], index: 0, kind: input, shape index: {}]   ;;  %s2887_s1 = inlined_call_operand.vmem [shape: f32[128,128], index: 1, kind: input, shape index: {}]   ;;  %s2888_s2 = inlined_call_operand.vmem [shape: f32[128,128], index: 2, kind: input, shape index: {}]   ;;  %s2889_s3 = inlined_call_operand.vmem [shape: f32[128,256], index: 3, kind: input, shape index: {}]   ;;  %s2890_s4 = inlined_call_operand.vmem [shape: f32[1,192], index: 4, kind: input, shape index: {}]   ;;  %s2891_s5 = inlined_call_operand.vmem [shape: f32[64,8], index: 5, kind: input, shape index: {}]   ;;  %s2892_s6 = inlined_call_operand.vmem [shape: f32[1,8], index: 6, kind: input, shape index: {}]   ;;  %s2893_s7 = inlined_call_operand.vmem [shape: f32[64,8], index: 7, kind: input, shape index: {}]   ;;  %s2894_s8 = inlined_call_operand.vmem [shape: f32[1,8], index: 8, kind: input, shape index: {}]   ;;  %s2895_s9 = inlined_call_operand.vmem [shape: f32[128,256], index: 9, kind: output, shape index: {0}]   ;;  %s2896_s10 = inlined_call_operand.vmem [shape: f32[128,128], index: 10, kind: output, shape index: {1}]  }
   0x1 LB: > { %s1731_s14 = sadd.s32 4294967295, %s2143_s13   ;;  %p1735_p0 = scmp.ge.s32.totalorder %s2143_s13, 1  ;;  %s2143_s13 = sphi %s2203_s13, %s21_s13  }
   0x2   : > { %p338_p1 = scmp.lt.s32.totalorder %s2143_s13, 3 }
   0x4   : > { %p339_p2 = pnand %p1735_p0, %p338_p1 }
   0x5   : > { %s1736_s19 = sshll.u32 (!%p339_p2), %s1731_s14, 3  ;;  %s2145_s20 = smov (!%p339_p2), 64  }
   0x6   : > { %342 = sbr.rel (%p339_p2) target bundleno = 1068 (0x42c), region = 56  ;;  %p393_p3 = scmp.lt.s32.totalorder (!%p339_p2), %s1736_s19, 15 }
   0x7   : > { %s2146_s24 = smov (!%p339_p2), 16  }
   0xb   : > { %v438_v0 = vld [vmem:[%s2889_s3 + $0xf0] sm:$0xff]  ;;  %v437_v2 = vld [vmem:[%s2889_s3 + $0xe0] sm:$0xff]  ;;  %s2898_s19 = smov (!%p393_p3, %s1736_s19), 15  ;;  %v754_v19 = vld [vmem:[%s2889_s3 + $0xf8] sm:$0xff]  ;;  %vm914_vm0 = vcmask 523264   ;;  %vm1044_vm1 = vcmask 64512  }
   0xc   : > { %v436_v1 = vld [vmem:[%s2889_s3 + $0xd0] sm:$0xff]  ;;  %613 = vrot.lane.b32.xlu0 %v438_v0, %s2145_s20  ;;  %v435_v3 = vld [vmem:[%s2889_s3 + $0xc0] sm:$0xff]  ;;  %1874 = vmatprep.subr.mxu0 %v438_v0  ;;  %s2230_s25 = sshll.u32 %s2898_s19, 3  ;;  %v753_v22 = vld [vmem:[%s2889_s3 + $0xe8] sm:$0xff]  ;;  %s1769_s18 = sshll.u32 %s2898_s19, 4  ;;  %vm1589_vm2 = vcmask 130048  }
   0xd   : > { %609 = vrot.lane.b32.xlu1 %v436_v1, %s2145_s20  ;;  %1875 = vmatpush3.msra.mxu0 %v438_v0  ;;  %v434_v4 = vld [vmem:[%s2889_s3 + $0xb0] sm:$0xff]  ;;  %v433_v5 = vld [vmem:[%s2889_s3 + $0xa0] sm:$0xff]  ;;  %s2242_s12 = scalar_lea.vmem %s2886_s0, %s2230_s25  ;;  %s2273_s11 = scalar_lea.vmem %s2887_s1, %s2230_s25  ;;  %v752_v23 = vld [vmem:[%s2889_s3 + $0xd8] sm:$0xff]  ;;  %vm1598_vm3 = vcmask 195584  }
   0xe   : > { %1876 = vmatprep.subr.mxu0 %v437_v2  ;;  %v440_v6 = vld [vmem:[%s2242_s12] sm:$0xff]  ;;  %v432_v7 = vld [vmem:[%s2889_s3 + $0x90] sm:$0xff]  ;;  %v441_v20 = vld [vmem:[%s2242_s12 + $0x8] sm:$0xff]  ;;  %s2329_s27 = scalar_lea.vmem %s2888_s2, %s2230_s25  ;;  %s2574_s22 = scalar_lea.vmem %s2895_s9, %s1769_s18 }
   0xf   : > { %1877 = vmatpush3.msra.mxu0 %v437_v2  ;;  %1906 = vmatprep.mubr.f32.mxu0 %v440_v6  ;;  %v431_v8 = vld [vmem:[%s2889_s3 + $0x80] sm:$0xff]  ;;  %v430_v9 = vld [vmem:[%s2889_s3 + $0x70] sm:$0xff]  ;;  %v443_v24 = vld [vmem:[%s2242_s12 + $0x18] sm:$0xff]  ;;  %s2828_s30 = scalar_lea.vmem %s2896_s10, %s2230_s25 }
  0x10   : > { %611 = vrot.lane.b32.xlu0 %v437_v2, %s2145_s20  ;;  %1878 = vmatprep.subr.mxu0 %v436_v1  ;;  %v429_v10 = vld [vmem:[%s2889_s3 + $0x60] sm:$0xff]  ;;  %v428_v11 = vld [vmem:[%s2889_s3 + $0x50] sm:$0xff]  ;;  %v751_v26 = vld [vmem:[%s2889_s3 + $0xc8] sm:$0xff] }
  0x11   : > { %607 = vrot.lane.b32.xlu1 %v435_v3, %s2145_s20  ;;  %1879 = vmatpush3.msra.mxu0 %v436_v1  ;;  %v427_v12 = vld [vmem:[%s2889_s3 + $0x40] sm:$0xff]  ;;  %v426_v14 = vld [vmem:[%s2889_s3 + $0x30] sm:$0xff]  ;;  %v750_v27 = vld [vmem:[%s2889_s3 + $0xb8] sm:$0xff] }
  0x12   : > { %1880 = vmatprep.subr.mxu0 %v435_v3  ;;  %v559_v13 = vld [vmem:[%s2273_s11] sm:$0xff]  ;;  %v424_v16 = vld [vmem:[%s2889_s3 + $0x10] sm:$0xff]  ;;  %v445_v28 = vld [vmem:[%s2242_s12 + $0x28] sm:$0xff] }
  0x13   : > { %1881 = vmatpush3.msra.mxu0 %v435_v3  ;;  %v425_v15 = vld [vmem:[%s2889_s3 + $0x20] sm:$0xff]  ;;  %1950 = vmatprep.mubr.f32.mxu1 %v559_v13  ;;  %v442_v21 = vld [vmem:[%s2242_s12 + $0x10] sm:$0xff]  ;;  %v749_v30 = vld [vmem:[%s2889_s3 + $0xa8] sm:$0xff] }
  0x14   : > { %605 = vrot.lane.b32.xlu0 %v434_v4, %s2145_s20  ;;  %1882 = vmatprep.subr.mxu0 %v434_v4  ;;  %v423_v17 = vld [vmem:[%s2889_s3] sm:$0xff]  ;;  %v446_v29 = vld [vmem:[%s2242_s12 + $0x30] sm:$0xff]  ;;  %v748_v31 = vld [vmem:[%s2889_s3 + $0x98] sm:$0xff] }
  0x15   : > { %603 = vrot.lane.b32.xlu1 %v433_v5, %s2145_s20  ;;  %1883 = vmatpush3.msra.mxu0 %v434_v4  ;;  %v2297_v18 = vld [vmem:[%s2890_s4] ss:$0 sm:$0xff]  ;;  %v447_v32 = vld [vmem:[%s2242_s12 + $0x38] sm:$0xff]  ;;  %v747_v34 = vld [vmem:[%s2889_s3 + $0x88] sm:$0xff] }
  0x16   : > { %1884 = vmatprep.subr.mxu0 %v433_v5  ;;  %v444_v25 = vld [vmem:[%s2242_s12 + $0x20] sm:$0xff]  ;;  %v746_v35 = vld [vmem:[%s2889_s3 + $0x78] sm:$0xff]  ;;  %v745_v36 = vld [vmem:[%s2889_s3 + $0x68] sm:$0xff] }
  0x17   : > { %1885 = vmatpush3.msra.mxu0 %v433_v5  ;;  %v756_v33 = vld [vmem:[%s2329_s27] sm:$0xff]  ;;  %v744_v37 = vld [vmem:[%s2889_s3 + $0x58] sm:$0xff]  ;;  %v743_v38 = vld [vmem:[%s2889_s3 + $0x48] sm:$0xff] }
  0x18   : > { %601 = vrot.lane.b32.xlu0 %v432_v7, %s2145_s20  ;;  %1886 = vmatprep.subr.mxu0 %v432_v7  ;;  %v742_v39 = vld [vmem:[%s2889_s3 + $0x38] sm:$0xff]  ;;  %v741_v40 = vld [vmem:[%s2889_s3 + $0x28] sm:$0xff]  ;;  %v758_v44 = vld [vmem:[%s2329_s27 + $0x10] sm:$0xff] }
  0x19   : > { %599 = vrot.lane.b32.xlu1 %v431_v8, %s2145_s20  ;;  %1887 = vmatpush3.msra.mxu0 %v432_v7  ;;  %v740_v41 = vld [vmem:[%s2889_s3 + $0x18] sm:$0xff]  ;;  %v739_v42 = vld [vmem:[%s2889_s3 + $0x8] sm:$0xff]  ;;  %v760_v46 = vld [vmem:[%s2329_s27 + $0x20] sm:$0xff] }
  0x1a   : > { %1888 = vmatprep.subr.mxu0 %v431_v8  ;;  %v757_v43 = vld [vmem:[%s2329_s27 + $0x8] sm:$0xff]  ;;  %v759_v45 = vld [vmem:[%s2329_s27 + $0x18] sm:$0xff]  ;;  %v762_v48 = vld [vmem:[%s2329_s27 + $0x30] sm:$0xff] }
  0x1b   : > { %1889 = vmatpush3.msra.mxu0 %v431_v8  ;;  %v761_v47 = vld [vmem:[%s2329_s27 + $0x28] sm:$0xff]  ;;  %v763_v49 = vld [vmem:[%s2329_s27 + $0x38] sm:$0xff]  ;;  %v561_v3 = vld [vmem:[%s2273_s11 + $0x10] sm:$0xff] }
  0x1c   : > { %597 = vrot.lane.b32.xlu0 %v430_v9, %s2145_s20  ;;  %1890 = vmatprep.subr.mxu0 %v430_v9  ;;  %v560_v2 = vld [vmem:[%s2273_s11 + $0x8] sm:$0xff]  ;;  %v562_v4 = vld [vmem:[%s2273_s11 + $0x18] sm:$0xff]  ;;  %v563_v5 = vld [vmem:[%s2273_s11 + $0x20] sm:$0xff] }
  0x1d   : > { %595 = vrot.lane.b32.xlu1 %v429_v10, %s2145_s20  ;;  %1891 = vmatpush3.msra.mxu0 %v430_v9  ;;  %v564_v6 = vld [vmem:[%s2273_s11 + $0x28] sm:$0xff]  ;;  %v565_v7 = vld [vmem:[%s2273_s11 + $0x30] sm:$0xff]  ;;  %v906_v8 = vld [vmem:[%s2891_s5 + $0x38] sm:$0xff] }
  0x1e   : > { %1892 = vmatprep.subr.mxu0 %v429_v10  ;;  %v905_v9 = vld [vmem:[%s2891_s5 + $0x30] sm:$0xff]  ;;  %v902_v13 = vld [vmem:[%s2891_s5 + $0x18] sm:$0xff] }
  0x1f   : > { %1893 = vmatpush3.msra.mxu0 %v429_v10  ;;  %v566_v10 = vld [vmem:[%s2273_s11 + $0x38] sm:$0xff]  ;;  %s2147_s11 = smov 8  }
  0x20   : > { %593 = vrot.lane.b32.xlu0 %v428_v11, %s2145_s20  ;;  %1894 = vmatprep.subr.mxu0 %v428_v11 }
  0x21   : > { %591 = vrot.lane.b32.xlu1 %v427_v12, %s2145_s20  ;;  %1895 = vmatpush3.msra.mxu0 %v428_v11  ;;  %v904_v11 = vld [vmem:[%s2891_s5 + $0x28] sm:$0xff] }
  0x22   : > { %1896 = vmatprep.subr.mxu0 %v427_v12 }
  0x23   : > { %1897 = vmatpush3.msra.mxu0 %v427_v12  ;;  %v903_v12 = vld [vmem:[%s2891_s5 + $0x20] sm:$0xff] }
  0x24   : > { %589 = vrot.lane.b32.xlu0 %v426_v14, %s2145_s20  ;;  %1898 = vmatprep.subr.mxu0 %v426_v14 }
  0x25   : > { %587 = vrot.lane.b32.xlu1 %v425_v15, %s2145_s20  ;;  %1899 = vmatpush3.msra.mxu0 %v426_v14  ;;  %v901_v14 = vld [vmem:[%s2891_s5 + $0x10] sm:$0xff] }
  0x26   : > { %1900 = vmatprep.subr.mxu0 %v425_v15 }
  0x27   : > { %1901 = vmatpush3.msra.mxu0 %v425_v15  ;;  %v900_v15 = vld [vmem:[%s2891_s5 + $0x8] sm:$0xff] }
  0x28   : > { %585 = vrot.lane.b32.xlu0 %v424_v16, %s2145_s20  ;;  %1902 = vmatprep.subr.mxu0 %v424_v16 }
  0x29   : > { %583 = vrot.lane.b32.xlu1 %v423_v17, %s2145_s20  ;;  %1903 = vmatpush3.msra.mxu0 %v424_v16  ;;  %v899_v16 = vld [vmem:[%s2891_s5] sm:$0xff] }
  0x2a   : > { %1904 = vmatprep.subr.mxu0 %v423_v17 }
  0x2b   : > { %1905 = vmatpush3.msra.mxu0 %v423_v17  ;;  %v2404_v17 = vld [vmem:[%s2893_s7 + $0x38] sm:$0xff] }
  0x2c   : > { %631 = vrot.lane.b32.xlu0 %v2297_v18, %s2145_s20  ;;  %1962 = vmatprep.subr.mxu0 %v754_v19 }
  0x2d   : > { %1907 = vmatmul.mubr.f32.vlgmr.msra.gmra.mxu0 %v441_v20 }
  0x2e   : > { %1963 = vmatpush3.msra.mxu0 %v754_v19  ;;  %1909 = vmatprep.mubr.f32.mxu0 %v442_v21 }
  0x2f   : > { %1964 = vmatprep.subr.mxu0 %v753_v22 }
  0x30   : > { %1965 = vmatpush3.msra.mxu0 %v753_v22 }
  0x31   : > { %1966 = vmatprep.subr.mxu0 %v752_v23  ;;  %1910 = vmatmul.mubr.f32.gmra.mxu0 %v443_v24 }
  0x32   : > { %1967 = vmatpush3.msra.mxu0 %v752_v23  ;;  %1912 = vmatprep.mubr.f32.mxu0 %v444_v25 }
  0x33   : > { %1968 = vmatprep.subr.mxu0 %v751_v26 }
  0x34   : > { %1969 = vmatpush3.msra.mxu0 %v751_v26 }
  0x35   : > { %1970 = vmatprep.subr.mxu0 %v750_v27  ;;  %1913 = vmatmul.mubr.f32.gmra.mxu0 %v445_v28 }
  0x36   : > { %1971 = vmatpush3.msra.mxu0 %v750_v27  ;;  %1915 = vmatprep.mubr.f32.mxu0 %v446_v29 }
  0x37   : > { %1972 = vmatprep.subr.mxu0 %v749_v30 }
  0x38   : > { %1973 = vmatpush3.msra.mxu0 %v749_v30 }
  0x39   : > { %1974 = vmatprep.subr.mxu0 %v748_v31  ;;  %1916 = vmatmul.mubr.f32.gmra.mxu0 %v447_v32  ;;  %v1748_v32 = vld [vmem:[%s2890_s4 + $0x1] ss:$0 sm:$0xff] }
  0x3a   : > { %1975 = vmatpush3.msra.mxu0 %v748_v31  ;;  %1994 = vmatprep.mubr.f32.mxu0 %v756_v33 }
  0x3b   : > { %1976 = vmatprep.subr.mxu0 %v747_v34 }
  0x3c   : > { %1977 = vmatpush3.msra.mxu0 %v747_v34 }
  0x3d   : > { %1978 = vmatprep.subr.mxu0 %v746_v35 }
  0x3e   : > { %1979 = vmatpush3.msra.mxu0 %v746_v35 }
  0x3f   : > { %1980 = vmatprep.subr.mxu0 %v745_v36 }
  0x40   : > { %1981 = vmatpush3.msra.mxu0 %v745_v36 }
  0x41   : > { %1982 = vmatprep.subr.mxu0 %v744_v37 }
  0x42   : > { %1983 = vmatpush3.msra.mxu0 %v744_v37 }
  0x43   : > { %1984 = vmatprep.subr.mxu0 %v743_v38 }
  0x44   : > { %1985 = vmatpush3.msra.mxu0 %v743_v38 }
  0x45   : > { %1986 = vmatprep.subr.mxu0 %v742_v39 }
  0x46   : > { %1987 = vmatpush3.msra.mxu0 %v742_v39 }
  0x47   : > { %1988 = vmatprep.subr.mxu0 %v741_v40 }
  0x48   : > { %1989 = vmatpush3.msra.mxu0 %v741_v40 }
  0x49   : > { %1990 = vmatprep.subr.mxu0 %v740_v41 }
  0x4a   : > { %1991 = vmatpush3.msra.mxu0 %v740_v41 }
  0x4b   : > { %1992 = vmatprep.subr.mxu0 %v739_v42 }
  0x4c   : > { %1993 = vmatpush3.msra.mxu0 %v739_v42 }
  0x4d   : > { %1995 = vmatmul.mubr.f32.vlgmr.msra.gmra.mxu0 %v757_v43 }
  0x4e   : > { %1997 = vmatprep.mubr.f32.mxu0 %v758_v44 }
  0x51   : > { %1998 = vmatmul.mubr.f32.gmra.mxu0 %v759_v45 }
  0x52   : > { %2000 = vmatprep.mubr.f32.mxu0 %v760_v46 }
  0x55   : > { %2001 = vmatmul.mubr.f32.gmra.mxu0 %v761_v47 }
  0x56   : > { %2003 = vmatprep.mubr.f32.mxu0 %v762_v48 }
  0x59   : > { %2004 = vmatmul.mubr.f32.gmra.mxu0 %v763_v49 }
  0x7e   : > { %v614_v50 = vpop.permute.xlu0 %613 }
  0x7f   : > { %v610_v51 = vpop.permute.xlu1 %609  ;;  %1918 = vmatprep.subr.mxu1 %v614_v50 }
  0x80   : > { %1919 = vmatpush3.msra.mxu1 %v614_v50 }
  0x82   : > { %v612_v52 = vpop.permute.xlu0 %611 }
  0x83   : > { %v608_v53 = vpop.permute.xlu1 %607  ;;  %1920 = vmatprep.subr.mxu1 %v612_v52 }
  0x84   : > { %1921 = vmatpush3.msra.mxu1 %v612_v52 }
  0x85   : > { %1922 = vmatprep.subr.mxu1 %v610_v51 }
  0x86   : > { %1923 = vmatpush3.msra.mxu1 %v610_v51  ;;  %v606_v54 = vpop.permute.xlu0 %605 }
  0x87   : > { %v604_v55 = vpop.permute.xlu1 %603  ;;  %1924 = vmatprep.subr.mxu1 %v608_v53 }
  0x88   : > { %1925 = vmatpush3.msra.mxu1 %v608_v53 }
  0x89   : > { %1926 = vmatprep.subr.mxu1 %v606_v54 }
  0x8a   : > { %1927 = vmatpush3.msra.mxu1 %v606_v54  ;;  %v602_v56 = vpop.permute.xlu0 %601 }
  0x8b   : > { %v600_v57 = vpop.permute.xlu1 %599  ;;  %1928 = vmatprep.subr.mxu1 %v604_v55 }
  0x8c   : > { %1929 = vmatpush3.msra.mxu1 %v604_v55 }
  0x8d   : > { %1930 = vmatprep.subr.mxu1 %v602_v56 }
  0x8e   : > { %1931 = vmatpush3.msra.mxu1 %v602_v56  ;;  %v598_v58 = vpop.permute.xlu0 %597 }
  0x8f   : > { %v596_v59 = vpop.permute.xlu1 %595  ;;  %1932 = vmatprep.subr.mxu1 %v600_v57 }
  0x90   : > { %1933 = vmatpush3.msra.mxu1 %v600_v57 }
  0x91   : > { %1934 = vmatprep.subr.mxu1 %v598_v58 }
  0x92   : > { %1935 = vmatpush3.msra.mxu1 %v598_v58  ;;  %v594_v60 = vpop.permute.xlu0 %593 }
  0x93   : > { %v592_v61 = vpop.permute.xlu1 %591  ;;  %1936 = vmatprep.subr.mxu1 %v596_v59 }
  0x94   : > { %1937 = vmatpush3.msra.mxu1 %v596_v59 }
  0x95   : > { %1938 = vmatprep.subr.mxu1 %v594_v60 }
  0x96   : > { %1939 = vmatpush3.msra.mxu1 %v594_v60  ;;  %v590_v62 = vpop.permute.xlu0 %589 }
  0x97   : > { %v588_v63 = vpop.permute.xlu1 %587  ;;  %1940 = vmatprep.subr.mxu1 %v592_v61 }
  0x98   : > { %1941 = vmatpush3.msra.mxu1 %v592_v61 }
  0x99   : > { %1942 = vmatprep.subr.mxu1 %v590_v62 }
  0x9a   : > { %1943 = vmatpush3.msra.mxu1 %v590_v62  ;;  %v586_v0 = vpop.permute.xlu0 %585 }
  0x9b   : > { %1944 = vmatprep.subr.mxu1 %v588_v63  ;;  %v584_v1 = vpop.permute.xlu1 %583 }
  0x9c   : > { %1945 = vmatpush3.msra.mxu1 %v588_v63 }
  0x9d   : > { %1946 = vmatprep.subr.mxu1 %v586_v0 }
  0x9e   : > { %1947 = vmatpush3.msra.mxu1 %v586_v0  ;;  %v2420_v38 = vpop.permute.xlu0 %631 }
  0x9f   : > { %1948 = vmatprep.subr.mxu1 %v584_v1 }
  0xa0   : > { %1949 = vmatpush3.msra.mxu1 %v584_v1 }
  0xa1   : > { %1951 = vmatmul.mubr.f32.vlgmr.msra.gmra.mxu1 %v560_v2  ;;  %2006 = vmatprep.subr.mxu1 %v906_v8 }
  0xa2   : > { %1953 = vmatprep.mubr.f32.mxu1 %v561_v3  ;;  %2007 = vmatpush3.msra.mxu1 %v906_v8 }
  0xa3   : > { %2008 = vmatprep.subr.mxu1 %v905_v9 }
  0xa4   : > { %2009 = vmatpush3.msra.mxu1 %v905_v9 }
  0xa5   : > { %1954 = vmatmul.mubr.f32.gmra.mxu1 %v562_v4  ;;  %2010 = vmatprep.subr.mxu1 %v904_v11 }
  0xa6   : > { %1956 = vmatprep.mubr.f32.mxu1 %v563_v5  ;;  %2011 = vmatpush3.msra.mxu1 %v904_v11  ;;  %v1179_v5 = vld [vmem:[%s2893_s7 + $0x30] sm:$0xff] }
  0xa7   : > { %2012 = vmatprep.subr.mxu1 %v903_v12 }
  0xa8   : > { %2013 = vmatpush3.msra.mxu1 %v903_v12 }
  0xa9   : > { %1957 = vmatmul.mubr.f32.gmra.mxu1 %v564_v6  ;;  %2014 = vmatprep.subr.mxu1 %v902_v13 }
  0xaa   : > { %1959 = vmatprep.mubr.f32.mxu1 %v565_v7  ;;  %2015 = vmatpush3.msra.mxu1 %v902_v13  ;;  %v1178_v13 = vld [vmem:[%s2893_s7 + $0x28] sm:$0xff] }
  0xab   : > { %2016 = vmatprep.subr.mxu1 %v901_v14 }
  0xac   : > { %2017 = vmatpush3.msra.mxu1 %v901_v14 }
  0xad   : > { %1960 = vmatmul.mubr.f32.gmra.mxu1 %v566_v10  ;;  %2018 = vmatprep.subr.mxu1 %v900_v15 }
  0xae   : > { %2019 = vmatpush3.msra.mxu1 %v900_v15 }
  0xaf   : > { %2020 = vmatprep.subr.mxu1 %v899_v16 }
  0xb0   : > { %2021 = vmatpush3.msra.mxu1 %v899_v16 }
  0xb1   : > { %2034 = vmatprep.subr.mxu1 %v2404_v17 }
  0xed   : > { %v1908_v19 = vpop.f32.mrf.mxu0 }
  0xee   : > { %v2416_v36 = vadd.f32 %v1908_v19, %v2297_v18 }
  0xef   : > { %v520_v20 = vpop.f32.mrf.mxu0 }
  0xf0   : > { %v2411_v33 = vadd.f32 %v2297_v18, %v520_v20  ;;  %v1177_v20 = vld [vmem:[%s2893_s7 + $0x20] sm:$0xff] }
  0xf1   : > { %v1911_v21 = vpop.f32.mrf.mxu0 }
  0xf2   : > { %v2432_v45 = vadd.f32 %v1911_v21, %v2297_v18 }
  0xf3   : > { %v530_v22 = vpop.f32.mrf.mxu0 }
  0xf4   : > { %v2423_v39 = vadd.f32 %v2297_v18, %v530_v22 }
  0xf5   : > { %v1914_v23 = vpop.f32.mrf.mxu0 }
  0xf6   : > { %v2447_v57 = vadd.f32 %v1914_v23, %v2297_v18 }
  0xf7   : > { %v540_v24 = vpop.f32.mrf.mxu0 }
  0xf8   : > { %v2438_v48 = vadd.f32 %v2297_v18, %v540_v24 }
  0xf9   : > { %v1917_v25 = vpop.f32.mrf.mxu0 }
  0xfa   : > { %v2475_v6 = vadd.f32 %v1917_v25, %v2297_v18  ;;  %v1176_v25 = vld [vmem:[%s2893_s7 + $0x18] sm:$0xff] }
  0xfb   : > { %v550_v26 = vpop.f32.mrf.mxu0 }
  0xfc   : > { %v2457_v61 = vadd.f32 %v2297_v18, %v550_v26 }
 0x10d   : > { %v1996_v27 = vpop.f32.mrf.mxu0 }
 0x10e   : > { %v2418_v37 = vadd.f32 %v1996_v27, %v1748_v32 }
 0x10f   : > { %v836_v28 = vpop.f32.mrf.mxu0 }
 0x110   : > { %v2413_v34 = vadd.f32 %v1748_v32, %v836_v28  ;;  %v876_v43 = vadd.f32 %v2418_v37, %v2416_v36 }
 0x111   : > { %v1999_v29 = vpop.f32.mrf.mxu0 }
 0x112   : > { %v875_v40 = vadd.f32 %v2413_v34, %v2411_v33  ;;  %v2434_v46 = vadd.f32 %v1999_v29, %v1748_v32  ;;  %v884_v55 = vmul.f32 0.5, %v876_v43 }
 0x113   : > { %v846_v30 = vpop.f32.mrf.mxu0 }
 0x114   : > { %v2427_v41 = vadd.f32 %v1748_v32, %v846_v30  ;;  %v883_v50 = vmul.f32 0.5, %v875_v40  ;;  %v878_v58 = vadd.f32 %v2434_v46, %v2432_v45  ;;  %v1175_v30 = vld [vmem:[%s2893_s7 + $0x10] sm:$0xff]  ;;  %v1173_v40 = vld [vmem:[%s2893_s7] sm:$0xff] }
 0x115   : > { %v2002_v31 = vpop.f32.mrf.mxu0 }
 0x116   : > { %v877_v51 = vadd.f32 %v2427_v41, %v2423_v39  ;;  %v2451_v59 = vadd.f32 %v2002_v31, %v1748_v32  ;;  %v886_v8 = vmul.f32 0.5, %v878_v58 }
 0x117   : > { %v856_v35 = vpop.f32.mrf.mxu0 }
 0x118   : > { %v2442_v52 = vadd.f32 %v1748_v32, %v856_v35  ;;  %v885_v1 = vmul.f32 0.5, %v877_v51  ;;  %v880_v9 = vadd.f32 %v2451_v59, %v2447_v57  ;;  %v1174_v35 = vld [vmem:[%s2893_s7 + $0x8] sm:$0xff] }
 0x119   : > { %v2005_v42 = vpop.f32.mrf.mxu0 }
 0x11a   : > { %v879_v2 = vadd.f32 %v2442_v52, %v2438_v48  ;;  %v2481_v10 = vadd.f32 %v2005_v42, %v1748_v32  ;;  %v888_v21 = vmul.f32 0.5, %v880_v9 }
 0x11b   : > { %v866_v53 = vpop.f32.mrf.mxu0 }
 0x11c   : > { %v2459_v62 = vadd.f32 %v1748_v32, %v866_v53  ;;  %v887_v14 = vmul.f32 0.5, %v879_v2  ;;  %v882_v22 = vadd.f32 %v2481_v10, %v2475_v6 }
 0x11e   : > { %v881_v18 = vadd.f32 %v2459_v62, %v2457_v61  ;;  %v890_v31 = vmul.f32 0.5, %v882_v22 }
 0x120   : > { %v889_v26 = vmul.f32 0.5, %v881_v18 }
 0x161   : > { %v1952_v44 = vpop.f32.mrf.mxu1 }
 0x162   : > { %v706_v47 = vadd.f32 %v1952_v44, %v2420_v38 }
 0x163   : > { %v700_v49 = vpop.f32.mrf.mxu1 }
 0x164   : > { %v701_v54 = vadd.f32 %v700_v49, %v2420_v38  ;;  %1439 = vrot.lane.b32.xlu1 %v706_v47, %s2145_s20  ;;  %v2461_v63 = vadd.f32 %v884_v55, %v706_v47 }
 0x165   : > { %v1955_v56 = vpop.f32.mrf.mxu1 }
 0x166   : > { %v2453_v60 = vadd.f32 %v883_v50, %v701_v54  ;;  %1437 = vrot.lane.b32.xlu0 %v701_v54, %s2145_s20  ;;  %v716_v3 = vadd.f32 %v1955_v56, %v2420_v38  ;;  %v1142_v42 = vmul.f32 %v2461_v63, %v2461_v63 }
 0x167   : > { %v710_v0 = vpop.f32.mrf.mxu1 }
 0x168   : > { %v711_v4 = vadd.f32 %v710_v0, %v2420_v38  ;;  %1461 = vrot.lane.b32.xlu1 %v2453_v60, %s2145_s20  ;;  %2022 = vmatprep.mubr.msk.f32.mxu1 %vm914_vm0, %v2453_v60  ;;  %v894_v15 = vadd.f32 %v886_v8, %v716_v3  ;;  %v1141_v43 = vmul.f32 %v2453_v60, %v2453_v60  ;;  %v1152_v44 = vsel %vm914_vm0, %v1142_v42, 0.0 }
 0x169   : > { %v1958_v7 = vpop.f32.mrf.mxu1  ;;  %2023 = vmatmul.mubr.msk.f32.vlgmr.msra.gmra.mxu1 %vm914_vm0, %v2461_v63 }
 0x16a   : > { %v2483_v11 = vadd.f32 %v885_v1, %v711_v4  ;;  %1463 = vrot.lane.b32.xlu0 %v2461_v63, %s2145_s20  ;;  %2035 = vmatpush3.msra.mxu1 %v2404_v17  ;;  %v726_v16 = vadd.f32 %v1958_v7, %v2420_v38  ;;  %v1149_v47 = vsel %vm914_vm0, %v1141_v43, 0.0  ;;  %v1144_v49 = vmul.f32 %v894_v15, %v894_v15 }
 0x16b   : > { %v720_v12 = vpop.f32.mrf.mxu1  ;;  %2036 = vmatprep.subr.mxu1 %v1179_v5 }
 0x16c   : > { %v2495_v19 = vadd.f32 %v720_v12, %v2420_v38  ;;  %1441 = vrot.lane.b32.xlu1 %v711_v4, %s2145_s20  ;;  %2025 = vmatprep.mubr.msk.f32.mxu1 %vm914_vm0, %v2483_v11  ;;  %v2513_v27 = vadd.f32 %v888_v21, %v726_v16  ;;  %v1143_v50 = vmul.f32 %v2483_v11, %v2483_v11  ;;  %v1158_v51 = vsel %vm914_vm0, %v1144_v49, 0.0 }
 0x16d   : > { %2037 = vmatpush3.msra.mxu1 %v1179_v5  ;;  %v1961_v17 = vpop.f32.mrf.mxu1 }
 0x16e   : > { %v2506_v23 = vadd.f32 %v887_v14, %v2495_v19  ;;  %2026 = vmatmul.mubr.msk.f32.gmra.mxu1 %vm914_vm0, %v894_v15  ;;  %2038 = vmatprep.subr.mxu1 %v1178_v13  ;;  %v736_v28 = vadd.f32 %v1961_v17, %v2420_v38  ;;  %v1155_v53 = vsel %vm914_vm0, %v1143_v50, 0.0 }
 0x16f   : > { %1443 = vrot.lane.b32.xlu0 %v716_v3, %s2145_s20  ;;  %2039 = vmatpush3.msra.mxu1 %v1178_v13  ;;  %v730_v24 = vpop.f32.mrf.mxu1 }
 0x170   : > { %v2517_v29 = vadd.f32 %v730_v24, %v2420_v38  ;;  %2040 = vmatprep.subr.mxu1 %v1177_v20  ;;  %2028 = vmatprep.mubr.msk.f32.mxu1 %vm914_vm0, %v2506_v23  ;;  %v2532_v38 = vadd.f32 %v890_v31, %v736_v28 }
 0x171   : > { %2041 = vmatpush3.msra.mxu1 %v1177_v20 }
 0x172   : > { %v2525_v32 = vadd.f32 %v889_v26, %v2517_v29  ;;  %2029 = vmatmul.mubr.msk.f32.gmra.mxu1 %vm914_vm0, %v2513_v27  ;;  %2042 = vmatprep.subr.mxu1 %v1176_v25 }
 0x173   : > { %2043 = vmatpush3.msra.mxu1 %v1176_v25 }
 0x174   : > { %2044 = vmatprep.subr.mxu1 %v1175_v30  ;;  %2031 = vmatprep.mubr.msk.f32.mxu1 %vm914_vm0, %v2525_v32 }
 0x175   : > { %2045 = vmatpush3.msra.mxu1 %v1175_v30 }
 0x176   : > { %2032 = vmatmul.mubr.msk.f32.gmra.mxu1 %vm914_vm0, %v2532_v38  ;;  %2046 = vmatprep.subr.mxu1 %v1174_v35 }
 0x177   : > { %2047 = vmatpush3.msra.mxu1 %v1174_v35  ;;  %2050 = vmatprep.mubr.msk.f32.mxu1 %vm914_vm0, %v2453_v60 }
 0x178   : > { %2048 = vmatprep.subr.mxu1 %v1173_v40 }
 0x179   : > { %2049 = vmatpush3.msra.mxu1 %v1173_v40 }
 0x17a   : > { %2051 = vmatmul.mubr.msk.f32.vlgmr.msra.gmra.mxu1 %vm914_vm0, %v2461_v63 }
 0x17b   : > { %2053 = vmatprep.mubr.msk.f32.mxu1 %vm914_vm0, %v2483_v11 }
 0x17e   : > { %2054 = vmatmul.mubr.msk.f32.gmra.mxu1 %vm914_vm0, %v894_v15 }
 0x17f   : > { %2056 = vmatprep.mubr.msk.f32.mxu1 %vm914_vm0, %v2506_v23 }
 0x182   : > { %2057 = vmatmul.mubr.msk.f32.gmra.mxu1 %vm914_vm0, %v2513_v27 }
 0x183   : > { %2059 = vmatprep.mubr.msk.f32.mxu1 %vm914_vm0, %v2525_v32 }
 0x186   : > { %2060 = vmatmul.mubr.msk.f32.gmra.mxu1 %vm914_vm0, %v2532_v38 }
 0x18e   : > { %1153 = vadd.xlane.f32.xlu0 %v1152_v44 }
 0x190   : > { %1150 = vadd.xlane.f32.xlu1 %v1149_v47 }
 0x1a1   : > { %1465 = vrot.lane.b32.xlu1 %v2483_v11, %s2145_s20 }
 0x1a4   : > { %1467 = vrot.lane.b32.xlu0 %v894_v15, %s2145_s20  ;;  %v2624_v15 = vld [vmem:[%s2892_s6] ss:$0 sm:$0xff] }
 0x1a8   : > { %1447 = vrot.lane.b32.xlu0 %v726_v16, %s2145_s20 }
 0x1c5   : > { %1159 = vadd.xlane.f32.xlu1 %v1158_v51 }
 0x1c7   : > { %1156 = vadd.xlane.f32.xlu0 %v1155_v53 }
 0x1d6   : > { %v1440_v54 = vpop.permute.xlu1 %1439  ;;  %1445 = vrot.lane.b32.xlu1 %v2495_v19, %s2145_s20 }
 0x1d7   : > { %v1486_v55 = vsel %vm914_vm0, %v2416_v36, %v1440_v54 }
 0x1d8   : > { %1503 = vst [vmem:[%s2574_s22 + $0x10] sm:$0xff] %v1486_v55  ;;  %v1438_v56 = vpop.permute.xlu0 %1437 }
 0x1d9   : > { %v1485_v58 = vsel %vm914_vm0, %v2411_v33, %v1438_v56 }
 0x1da   : > { %1501 = vst [vmem:[%s2574_s22] sm:$0xff] %v1485_v58  ;;  %v1462_v60 = vpop.permute.xlu1 %1461 }
 0x1db   : > { %v1493_v63 = vsel %vm914_vm0, %v2413_v34, %v1462_v60  ;;  %v1146_v34 = vmul.f32 %v2513_v27, %v2513_v27 }
 0x1dc   : > { %1502 = vst [vmem:[%s2574_s22 + $0x8] sm:$0xff] %v1493_v63  ;;  %v1464_v0 = vpop.permute.xlu0 %1463 }
 0x1dd   : > { %v1494_v1 = vsel %vm914_vm0, %v2418_v37, %v1464_v0  ;;  %1451 = vrot.lane.b32.xlu0 %v736_v28, %s2145_s20  ;;  %v1145_v37 = vmul.f32 %v2506_v23, %v2506_v23  ;;  %v1164_v4 = vsel %vm914_vm0, %v1146_v34, 0.0 }
 0x1de   : > { %1504 = vst [vmem:[%s2574_s22 + $0x18] sm:$0xff] %v1494_v1  ;;  %v1442_v36 = vpop.permute.xlu1 %1441 }
 0x1df   : > { %v1487_v2 = vsel %vm914_vm0, %v2423_v39, %v1442_v36  ;;  %v1161_v5 = vsel %vm914_vm0, %v1145_v37, 0.0  ;;  %v1147_v39 = vmul.f32 %v2525_v32, %v2525_v32  ;;  %v1766_v36 = vld [vmem:[%s2894_s8] ss:$0 sm:$0xff] }
 0x1e0   : > { %1505 = vst [vmem:[%s2574_s22 + $0x20] sm:$0xff] %v1487_v2 }
 0x1e1   : > { %v1444_v3 = vpop.permute.xlu0 %1443 }
 0x1e2   : > { %v1488_v33 = vsel %vm914_vm0, %v2432_v45, %v1444_v3  ;;  %v1167_v45 = vsel %vm914_vm0, %v1147_v39, 0.0 }
 0x1e3   : > { %1507 = vst [vmem:[%s2574_s22 + $0x30] sm:$0xff] %v1488_v33 }
 0x1fa   : > { %1165 = vadd.xlane.f32.xlu1 %v1164_v4 }
 0x1fc   : > { %1162 = vadd.xlane.f32.xlu0 %v1161_v5 }
 0x200   : > { %1168 = vadd.xlane.f32.xlu0 %v1167_v45 }
 0x20b   : > { %1449 = vrot.lane.b32.xlu1 %v2517_v29, %s2145_s20 }
 0x217   : > { %v2608_v7 = vpop.xlane.xlu0 %1153 }
 0x219   : > { %v2610_v8 = vpop.xlane.xlu1 %1150 }
 0x21a   : > { %v1293_v2 = vadd.f32 %v1766_v36, %v2610_v8 }
 0x21b   : > { %v1468_v9 = vpop.permute.xlu0 %1467 }
 0x21c   : > { %v1496_v11 = vsel %vm914_vm0, %v2434_v46, %v1468_v9  ;;  %v1148_v46 = vmul.f32 %v2532_v38, %v2532_v38 }
 0x21d   : > { %1508 = vst [vmem:[%s2574_s22 + $0x38] sm:$0xff] %v1496_v11  ;;  %v1466_v18 = vpop.permute.xlu1 %1465 }
 0x21e   : > { %v1495_v12 = vsel %vm914_vm0, %v2427_v41, %v1466_v18  ;;  %v1170_v41 = vsel %vm914_vm0, %v1148_v46, 0.0 }
 0x21f   : > { %1506 = vst [vmem:[%s2574_s22 + $0x28] sm:$0xff] %v1495_v12  ;;  %v1448_v13 = vpop.permute.xlu0 %1447 }
 0x220   : > { %v1490_v14 = vsel %vm914_vm0, %v2447_v57, %v1448_v13 }
 0x221   : > { %1511 = vst [vmem:[%s2574_s22 + $0x50] sm:$0xff] %v1490_v14 }
 0x229   : > { %v2024_v16 = vpop.f32.mrf.mxu1 }
 0x22a   : > { %v2627_v19 = vadd.f32 %v2024_v16, %v2624_v15 }
 0x22b   : > { %v1005_v17 = vpop.f32.mrf.mxu1 }
 0x22c   : > { %1559 = vrot.lane.b32.xlu0 %v2627_v19, %s2146_s24  ;;  %v1048_v57 = vsel %vm1044_vm1, %v2627_v19, -inf  ;;  %v2637_v20 = vadd.f32 %v2624_v15, %v1005_v17 }
 0x22e   : > { %v1045_v21 = vsel %vm1044_vm1, %v2637_v20, -inf  ;;  %v2027_v30 = vpop.f32.mrf.mxu1 }
 0x22f   : > { %1171 = vadd.xlane.f32.xlu1 %v1170_v41  ;;  %v2652_v31 = vadd.f32 %v2027_v30, %v2624_v15  ;;  %v1294_v30 = vadd.f32 %v1766_v36, %v2608_v7 }
 0x230   : > { %v1015_v40 = vpop.f32.mrf.mxu1 }
 0x231   : > { %v1054_v35 = vsel %vm1044_vm1, %v2652_v31, -inf }
 0x232   : > { %v2030_v47 = vpop.f32.mrf.mxu1 }
 0x233   : > { %1049 = vmax.xlane.f32.xlu1 %v1048_v57  ;;  %v2671_v49 = vadd.f32 %v2030_v47, %v2624_v15 }
 0x234   : > { %v1025_v51 = vpop.f32.mrf.mxu1 }
 0x235   : > { %v1060_v50 = vsel %vm1044_vm1, %v2671_v49, -inf  ;;  %v2678_v54 = vadd.f32 %v2624_v15, %v1025_v51 }
 0x236   : > { %v2033_v53 = vpop.f32.mrf.mxu1 }
 0x237   : > { %v1057_v58 = vsel %vm1044_vm1, %v2678_v54, -inf  ;;  %v2689_v39 = vadd.f32 %v2033_v53, %v2624_v15 }
 0x238   : > { %v1035_v55 = vpop.f32.mrf.mxu1 }
 0x239   : > { %v1066_v57 = vsel %vm1044_vm1, %v2689_v39, -inf }
 0x244   : > { %1557 = vrot.lane.b32.xlu1 %v2637_v20, %s2146_s24 }
 0x24b   : > { %1046 = vmax.xlane.f32.xlu0 %v1045_v21 }
 0x24e   : > { %v2643_v22 = vpop.xlane.xlu1 %1159 }
 0x250   : > { %v1157_v24 = vpop.xlane.xlu0 %1156 }
 0x251   : > { %v1295_v37 = vadd.f32 %v1766_v36, %v1157_v24 }
 0x252   : > { %v1446_v25 = vpop.permute.xlu1 %1445 }
 0x253   : > { %v1489_v26 = vsel %vm914_vm0, %v2438_v48, %v1446_v25  ;;  %v2659_v48 = vadd.f32 %v2624_v15, %v1015_v40 }
 0x254   : > { %1509 = vst [vmem:[%s2574_s22 + $0x40] sm:$0xff] %v1489_v26  ;;  %v1452_v28 = vpop.permute.xlu0 %1451 }
 0x255   : > { %v1492_v29 = vsel %vm914_vm0, %v2475_v6, %v1452_v28  ;;  %v1051_v6 = vsel %vm1044_vm1, %v2659_v48, -inf }
 0x256   : > { %1515 = vst [vmem:[%s2574_s22 + $0x70] sm:$0xff] %v1492_v29 }
 0x261   : > { %1563 = vrot.lane.b32.xlu0 %v2652_v31, %s2146_s24 }
 0x268   : > { %1055 = vmax.xlane.f32.xlu1 %v1054_v35 }
 0x279   : > { %1561 = vrot.lane.b32.xlu1 %v2659_v48, %s2146_s24 }
 0x280   : > { %1052 = vmax.xlane.f32.xlu0 %v1051_v6  ;;  %v1296_v6 = vadd.f32 %v1766_v36, %v2643_v22 }
 0x283   : > { %v2665_v42 = vpop.xlane.xlu1 %1165 }
 0x285   : > { %v1163_v33 = vpop.xlane.xlu0 %1162 }
 0x286   : > { %v1297_v11 = vadd.f32 %v1766_v36, %v1163_v33 }
 0x287   : > { %v1450_v43 = vpop.permute.xlu1 %1449 }
 0x288   : > { %v1491_v44 = vsel %vm914_vm0, %v2457_v61, %v1450_v43  ;;  %v2052_v61 = vpop.f32.mrf.mxu1 }
 0x289   : > { %1513 = vst [vmem:[%s2574_s22 + $0x60] sm:$0xff] %v1491_v44  ;;  %v1169_v18 = vpop.xlane.xlu0 %1168  ;;  %v1302_v29 = vmul.f32 2.0, %v2052_v61  ;;  %v2698_v44 = vadd.f32 %v2624_v15, %v1035_v55 }
 0x28a   : > { %v1247_v56 = vpop.f32.mrf.mxu1  ;;  %v1299_v46 = vadd.f32 %v1766_v36, %v1169_v18 }
 0x28b   : > { %v1301_v1 = vmul.f32 2.0, %v1247_v56  ;;  %v1310_v40 = vsub.f32 %v1294_v30, %v1302_v29  ;;  %v1298_v56 = vadd.f32 %v1766_v36, %v2665_v42  ;;  %v1063_v55 = vsel %vm1044_vm1, %v2698_v44, -inf }
 0x28c   : > { %v2055_v60 = vpop.f32.mrf.mxu1 }
 0x28d   : > { %v1309_v34 = vsub.f32 %v1293_v2, %v1301_v1  ;;  %v1304_v43 = vmul.f32 2.0, %v2055_v60  ;;  %v1318_v51 = vmax.f32 %v1310_v40, 0.0 }
 0x28e   : > { %v1257_v63 = vpop.f32.mrf.mxu1 }
 0x28f   : > { %v1303_v4 = vmul.f32 2.0, %v1257_v63  ;;  %v1317_v45 = vmax.f32 %v1309_v34, 0.0  ;;  %v1312_v53 = vsub.f32 %v1296_v6, %v1304_v43  ;;  %v1326_v2 = vadd.f32 1.0, %v1318_v51 }
 0x290   : > { %v2058_v0 = vpop.f32.mrf.mxu1 }
 0x291   : > { %v1311_v9 = vsub.f32 %v1295_v37, %v1303_v4  ;;  %v1325_v14 = vadd.f32 1.0, %v1317_v45  ;;  %v1306_v7 = vmul.f32 2.0, %v2058_v0  ;;  %v1320_v22 = vmax.f32 %v1312_v53, 0.0 }
 0x292   : > { %v1267_v3 = vpop.f32.mrf.mxu1 }
 0x293   : > { %v1305_v12 = vmul.f32 2.0, %v1267_v3  ;;  %v1319_v8 = vmax.f32 %v1311_v9, 0.0  ;;  %2073 = vrcp.f32 %v1325_v14  ;;  %v1314_v60 = vsub.f32 %v1298_v56, %v1306_v7 }
 0x294   : > { %v2061_v5 = vpop.f32.mrf.mxu1  ;;  %v1328_v4 = vadd.f32 1.0, %v1320_v22 }
 0x295   : > { %v1313_v16 = vsub.f32 %v1297_v11, %v1305_v12  ;;  %v1327_v17 = vadd.f32 1.0, %v1319_v8  ;;  %v1308_v15 = vmul.f32 2.0, %v2061_v5  ;;  %v1322_v45 = vmax.f32 %v1314_v60, 0.0 }
 0x296   : > { %1567 = vrot.lane.b32.xlu0 %v2671_v49, %s2146_s24  ;;  %v1277_v13 = vpop.f32.mrf.mxu1 }
 0x297   : > { %v1307_v41 = vmul.f32 2.0, %v1277_v13  ;;  %v1321_v21 = vmax.f32 %v1313_v16, 0.0  ;;  %2075 = vrcp.f32 %v1327_v17  ;;  %v1330_v18 = vadd.f32 1.0, %v1322_v45 }
 0x299   : > { %v1315_v24 = vsub.f32 %v1299_v46, %v1307_v41  ;;  %v1329_v25 = vadd.f32 1.0, %v1321_v21 }
 0x29b   : > { %v1323_v26 = vmax.f32 %v1315_v24, 0.0  ;;  %2077 = vrcp.f32 %v1329_v25 }
 0x29d   : > { %1061 = vmax.xlane.f32.xlu1 %v1060_v50  ;;  %v1331_v28 = vadd.f32 1.0, %v1323_v26 }
 0x29e   : > { %v2727_v51 = vpop.permute.xlu0 %1559 }
 0x29f   : > { %2079 = vrcp.f32 %v1331_v28 }
 0x2a0   : > { %v2074_v35 = vpop.eup %2073  ;;  %2081 = vrcp.f32 %v1326_v2 }
 0x2a1   : > { %v1341_v47 = vmul.f32 %v2074_v35, %v1325_v14  ;;  %2083 = vrcp.f32 %v1328_v4 }
 0x2a2   : > { %2085 = vrcp.f32 %v1330_v18 }
 0x2a3   : > { %v1349_v61 = vsub.f32 2.0, %v1341_v47 }
 0x2a4   : > { %v2076_v50 = vpop.eup %2075 }
 0x2a5   : > { %v1343_v63 = vmul.f32 %v2076_v50, %v1327_v17  ;;  %v2705_v33 = vmul.f32 %v2074_v35, %v1349_v61 }
 0x2a7   : > { %v1351_v34 = vsub.f32 2.0, %v1343_v63  ;;  %v1365_v9 = vsel %vm1044_vm1, %v2705_v33, 0.0 }
 0x2a8   : > { %v2078_v1 = vpop.eup %2077 }
 0x2a9   : > { %v1345_v42 = vmul.f32 %v2078_v1, %v1329_v25  ;;  %v2709_v11 = vmul.f32 %v2076_v50, %v1351_v34 }
 0x2ab   : > { %v1371_v13 = vsel %vm1044_vm1, %v2709_v11, 0.0 }
 0x2ac   : > { %v2080_v37 = vpop.eup %2079 }
 0x2ad   : > { %v1347_v5 = vmul.f32 %v2080_v37, %v1331_v28 }
 0x2ae   : > { %1565 = vrot.lane.b32.xlu1 %v2678_v54, %s2146_s24 }
 0x2af   : > { %v1355_v8 = vsub.f32 2.0, %v1347_v5 }
 0x2b1   : > { %v2717_v41 = vmul.f32 %v2080_v37, %v1355_v8 }
 0x2b3   : > { %v1383_v17 = vsel %vm1044_vm1, %v2717_v41, 0.0 }
 0x2b5   : > { %1058 = vmax.xlane.f32.xlu0 %v1057_v58 }
 0x2b8   : > { %v1172_v58 = vpop.xlane.xlu1 %1171 }
 0x2b9   : > { %v1300_v3 = vadd.f32 %v1766_v36, %v1172_v58  ;;  %v1353_v36 = vsub.f32 2.0, %v1345_v42 }
 0x2bb   : > { %v1316_v0 = vsub.f32 %v1300_v3, %v1308_v15  ;;  %v2713_v14 = vmul.f32 %v2078_v1, %v1353_v36 }
 0x2bc   : > { %v1050_v34 = vpop.xlane.xlu1 %1049 }
 0x2bd   : > { %v1324_v12 = vmax.f32 %v1316_v0, 0.0  ;;  %v1377_v46 = vsel %vm1044_vm1, %v2713_v14, 0.0  ;;  %v2757_v45 = vsub.f32 %v2627_v19, %v1050_v34 }
 0x2bf   : > { %v1332_v16 = vadd.f32 1.0, %v1324_v12 }
 0x2c1   : > { %2087 = vrcp.f32 %v1332_v16 }
 0x2cb   : > { %1571 = vrot.lane.b32.xlu0 %v2689_v39, %s2146_s24 }
 0x2d2   : > { %1067 = vmax.xlane.f32.xlu1 %v1066_v57  ;;  %v2082_v57 = vpop.eup %2081 }
 0x2d3   : > { %v1342_v21 = vmul.f32 %v2082_v57, %v1326_v2  ;;  %v2084_v24 = vpop.eup %2083 }
 0x2d4   : > { %v1344_v26 = vmul.f32 %v2084_v24, %v1328_v4  ;;  %v2086_v28 = vpop.eup %2085  ;;  %v1047_v7 = vpop.xlane.xlu0 %1046 }
 0x2d5   : > { %v1350_v25 = vsub.f32 2.0, %v1342_v21  ;;  %v1346_v35 = vmul.f32 %v2086_v28, %v1330_v18  ;;  %v2088_v40 = vpop.eup %2087  ;;  %v2744_v22 = vsub.f32 %v2637_v20, %v1047_v7 }
 0x2d6   : > { %v1352_v30 = vsub.f32 2.0, %v1344_v26  ;;  %v1348_v50 = vmul.f32 %v2088_v40, %v1332_v16 }
 0x2d7   : > { %v2721_v29 = vmul.f32 %v2082_v57, %v1350_v25  ;;  %v1354_v47 = vsub.f32 2.0, %v1346_v35  ;;  %v1077_v3 = vmul.f32 1.442695, %v2744_v22 }
 0x2d8   : > { %v2725_v43 = vmul.f32 %v2084_v24, %v1352_v30  ;;  %v1356_v58 = vsub.f32 2.0, %v1348_v50  ;;  %v2741_v2 = vpop.permute.xlu0 %1563 }
 0x2d9   : > { %v1368_v6 = vsel %vm1044_vm1, %v2721_v29, 0.0  ;;  %v2731_v56 = vmul.f32 %v2086_v28, %v1354_v47  ;;  %2089 = vpow2.f32 %v1077_v3 }
 0x2da   : > { %v1374_v53 = vsel %vm1044_vm1, %v2725_v43, 0.0  ;;  %v2735_v63 = vmul.f32 %v2088_v40, %v1356_v58 }
 0x2db   : > { %v1380_v61 = vsel %vm1044_vm1, %v2731_v56, 0.0 }
 0x2dc   : > { %v1386_v1 = vsel %vm1044_vm1, %v2735_v63, 0.0 }
 0x2e3   : > { %1569 = vrot.lane.b32.xlu1 %v2698_v44, %s2146_s24 }
 0x2e6   : > { %v2090_v37 = vpop.eup %2089 }
 0x2e7   : > { %v1093_v20 = vsel %vm1044_vm1, %v2090_v37, 0.0 }
 0x2ea   : > { %1064 = vmax.xlane.f32.xlu0 %v1063_v55 }
 0x2ee   : > { %1366 = vadd.xlane.f32.xlu0 %v1365_v9  ;;  %v1079_v9 = vmul.f32 1.442695, %v2757_v45 }
 0x2f2   : > { %1372 = vadd.xlane.f32.xlu0 %v1371_v13 }
 0x2f6   : > { %1378 = vadd.xlane.f32.xlu0 %v1377_v46 }
 0x2fa   : > { %1384 = vadd.xlane.f32.xlu0 %v1383_v17 }
 0x307   : > { %1369 = vadd.xlane.f32.xlu1 %v1368_v6 }
 0x309   : > { %v1053_v60 = vpop.xlane.xlu0 %1052 }
 0x30a   : > { %v2748_v15 = vsub.f32 %v2659_v48, %v1053_v60 }
 0x30b   : > { %1375 = vadd.xlane.f32.xlu1 %v1374_v53 }
 0x30c   : > { %v1081_v55 = vmul.f32 1.442695, %v2748_v15 }
 0x30d   : > { %v2770_v19 = vpop.permute.xlu0 %1567 }
 0x30e   : > { %2091 = vpow2.f32 %v1081_v55 }
 0x30f   : > { %1381 = vadd.xlane.f32.xlu1 %v1380_v61  ;;  %2093 = vpow2.f32 %v1079_v9 }
 0x310   : > { %1471 = vrot.lane.b32.xlu0 %v2513_v27, %s2145_s20  ;;  %v2753_v27 = vpop.permute.xlu1 %1557 }
 0x313   : > { %1387 = vadd.xlane.f32.xlu1 %v1386_v1 }
 0x314   : > { %v1056_v42 = vpop.xlane.xlu1 %1055 }
 0x315   : > { %v2764_v36 = vsub.f32 %v2652_v31, %v1056_v42 }
 0x317   : > { %v1083_v5 = vmul.f32 1.442695, %v2764_v36 }
 0x318   : > { %v2759_v48 = vpop.permute.xlu1 %1561 }
 0x319   : > { %2095 = vpow2.f32 %v1083_v5 }
 0x31b   : > { %v2092_v4 = vpop.eup %2091 }
 0x31c   : > { %v1099_v0 = vsel %vm1044_vm1, %v2092_v4, 0.0  ;;  %v2094_v16 = vpop.eup %2093 }
 0x31d   : > { %v1096_v46 = vsel %vm1044_vm1, %v2094_v16, 0.0 }
 0x324   : > { %1469 = vrot.lane.b32.xlu1 %v2506_v23, %s2145_s20 }
 0x326   : > { %v1062_v23 = vpop.xlane.xlu1 %1061  ;;  %v2096_v57 = vpop.eup %2095 }
 0x327   : > { %v2768_v18 = vsub.f32 %v2671_v49, %v1062_v23  ;;  %v1102_v49 = vsel %vm1044_vm1, %v2096_v57, 0.0 }
 0x329   : > { %v1087_v12 = vmul.f32 1.442695, %v2768_v18 }
 0x32b   : > { %2097 = vpow2.f32 %v1087_v12 }
 0x32f   : > { %1094 = vadd.xlane.f32.xlu0 %v1093_v20 }
 0x333   : > { %1100 = vadd.xlane.f32.xlu0 %v1099_v0 }
 0x338   : > { %v2098_v17 = vpop.eup %2097 }
 0x339   : > { %v1108_v21 = vsel %vm1044_vm1, %v2098_v17, 0.0 }
 0x33e   : > { %v1059_v13 = vpop.xlane.xlu0 %1058 }
 0x33f   : > { %v2774_v8 = vsub.f32 %v2678_v54, %v1059_v13  ;;  %v2781_v54 = vpop.permute.xlu1 %1565 }
 0x341   : > { %v1085_v31 = vmul.f32 1.442695, %v2774_v8 }
 0x342   : > { %v2788_v6 = vpop.permute.xlu0 %1571 }
 0x343   : > { %2099 = vpow2.f32 %v1085_v31 }
 0x348   : > { %1097 = vadd.xlane.f32.xlu1 %v1096_v46 }
 0x34c   : > { %1103 = vadd.xlane.f32.xlu1 %v1102_v49 }
 0x350   : > { %v2100_v24 = vpop.eup %2099  ;;  %1109 = vadd.xlane.f32.xlu1 %v1108_v21 }
 0x351   : > { %v1105_v25 = vsel %vm1044_vm1, %v2100_v24, 0.0 }
 0x352   : > { %1106 = vadd.xlane.f32.xlu0 %v1105_v25 }
 0x35b   : > { %v1068_v26 = vpop.xlane.xlu1 %1067 }
 0x35c   : > { %v2784_v28 = vsub.f32 %v2689_v39, %v1068_v26 }
 0x35e   : > { %v1091_v30 = vmul.f32 1.442695, %v2784_v28 }
 0x35f   : > { %v2798_v0 = vpop.permute.xlu1 %1569 }
 0x360   : > { %2101 = vpow2.f32 %v1091_v30 }
 0x36d   : > { %v2102_v35 = vpop.eup %2101 }
 0x36e   : > { %v1114_v40 = vsel %vm1044_vm1, %v2102_v35, 0.0 }
 0x36f   : > { %1115 = vadd.xlane.f32.xlu1 %v1114_v40 }
 0x373   : > { %v1065_v47 = vpop.xlane.xlu0 %1064 }
 0x374   : > { %v2791_v50 = vsub.f32 %v2698_v44, %v1065_v47 }
 0x376   : > { %v1089_v53 = vmul.f32 1.442695, %v2791_v50 }
 0x377   : > { %v1367_v58 = vpop.xlane.xlu0 %1366 }
 0x378   : > { %2103 = vpow2.f32 %v1089_v53 }
 0x379   : > { %2105 = vrcp.f32 %v1367_v58 }
 0x37b   : > { %v1373_v39 = vpop.xlane.xlu0 %1372 }
 0x37c   : > { %2107 = vrcp.f32 %v1373_v39 }
 0x37f   : > { %v1379_v7 = vpop.xlane.xlu0 %1378 }
 0x380   : > { %2109 = vrcp.f32 %v1379_v7 }
 0x383   : > { %v1385_v61 = vpop.xlane.xlu0 %1384 }
 0x384   : > { %2111 = vrcp.f32 %v1385_v61 }
 0x385   : > { %v2104_v1 = vpop.eup %2103 }
 0x386   : > { %v2106_v60 = vpop.eup %2105  ;;  %v1111_v3 = vsel %vm1044_vm1, %v2104_v1, 0.0 }
 0x387   : > { %v1397_v55 = vmul.f32 %v2106_v60, %v1367_v58  ;;  %1112 = vadd.xlane.f32.xlu0 %v1111_v3  ;;  %v1472_v44 = vpop.permute.xlu0 %1471 }
 0x388   : > { %v1498_v34 = vsel %vm914_vm0, %v2451_v59, %v1472_v44 }
 0x389   : > { %v2108_v42 = vpop.eup %2107  ;;  %v1405_v37 = vsub.f32 2.0, %v1397_v55  ;;  %1512 = vst [vmem:[%s2574_s22 + $0x58] sm:$0xff] %v1498_v34 }
 0x38a   : > { %v1399_v20 = vmul.f32 %v2108_v42, %v1373_v39 }
 0x38b   : > { %v1413_v4 = vmul.f32 %v2106_v60, %v1405_v37 }
 0x38c   : > { %v1407_v9 = vsub.f32 2.0, %v1399_v20 }
 0x38d   : > { %v2110_v23 = vpop.eup %2109  ;;  %v1421_v5 = vmul.f32 %v1413_v4, %v2705_v33 }
 0x38e   : > { %v1415_v12 = vmul.f32 %v2108_v42, %v1407_v9  ;;  %v1401_v13 = vmul.f32 %v2110_v23, %v1379_v7 }
 0x38f   : > { %1525 = vrot.lane.b32.xlu1 %v1421_v5, %s2147_s11 }
 0x390   : > { %v1409_v31 = vsub.f32 2.0, %v1401_v13  ;;  %v1370_v16 = vpop.xlane.xlu1 %1369  ;;  %v1423_v59 = vmul.f32 %v1415_v12, %v2709_v11 }
 0x391   : > { %v2112_v46 = vpop.eup %2111  ;;  %2113 = vrcp.f32 %v1370_v16 }
 0x392   : > { %v1417_v57 = vmul.f32 %v2110_v23, %v1409_v31  ;;  %v1403_v49 = vmul.f32 %v2112_v46, %v1385_v61 }
 0x393   : > { %1529 = vrot.lane.b32.xlu1 %v1423_v59, %s2147_s11 }
 0x394   : > { %v1411_v17 = vsub.f32 2.0, %v1403_v49  ;;  %v1376_v21 = vpop.xlane.xlu1 %1375  ;;  %v1425_v24 = vmul.f32 %v1417_v57, %v2713_v14 }
 0x395   : > { %2115 = vrcp.f32 %v1376_v21 }
 0x396   : > { %v1419_v33 = vmul.f32 %v2112_v46, %v1411_v17 }
 0x397   : > { %1533 = vrot.lane.b32.xlu1 %v1425_v24, %s2147_s11 }
 0x398   : > { %v1382_v25 = vpop.xlane.xlu1 %1381  ;;  %v1427_v26 = vmul.f32 %v1419_v33, %v2717_v41 }
 0x399   : > { %2117 = vrcp.f32 %v1382_v25 }
 0x39b   : > { %1537 = vrot.lane.b32.xlu1 %v1427_v26, %s2147_s11 }
 0x39c   : > { %v1388_v11 = vpop.xlane.xlu1 %1387 }
 0x39d   : > { %2119 = vrcp.f32 %v1388_v11 }
 0x39e   : > { %v2114_v30 = vpop.eup %2113 }
 0x39f   : > { %v1398_v35 = vmul.f32 %v2114_v30, %v1370_v16  ;;  %1473 = vrot.lane.b32.xlu1 %v2525_v32, %s2145_s20 }
 0x3a0   : > { %v1470_v40 = vpop.permute.xlu1 %1469 }
 0x3a1   : > { %v1406_v14 = vsub.f32 2.0, %v1398_v35  ;;  %v1497_v47 = vsel %vm914_vm0, %v2442_v52, %v1470_v40 }
 0x3a2   : > { %v2116_v53 = vpop.eup %2115  ;;  %1510 = vst [vmem:[%s2574_s22 + $0x48] sm:$0xff] %v1497_v47 }
 0x3a3   : > { %v1414_v58 = vmul.f32 %v2114_v30, %v1406_v14  ;;  %v1400_v39 = vmul.f32 %v2116_v53, %v1376_v21 }
 0x3a5   : > { %v1408_v41 = vsub.f32 2.0, %v1400_v39  ;;  %v1422_v7 = vmul.f32 %v1414_v58, %v2721_v29 }
 0x3a6   : > { %v2118_v61 = vpop.eup %2117 }
 0x3a7   : > { %v1416_v1 = vmul.f32 %v2116_v53, %v1408_v41  ;;  %v1402_v60 = vmul.f32 %v2118_v61, %v1382_v25  ;;  %1527 = vrot.lane.b32.xlu0 %v1422_v7, %s2147_s11 }
 0x3a9   : > { %v1410_v3 = vsub.f32 2.0, %v1402_v60  ;;  %v1424_v32 = vmul.f32 %v1416_v1, %v2725_v43 }
 0x3aa   : > { %v2120_v55 = vpop.eup %2119 }
 0x3ab   : > { %v1418_v44 = vmul.f32 %v2118_v61, %v1410_v3  ;;  %v1404_v34 = vmul.f32 %v2120_v55, %v1388_v11  ;;  %1531 = vrot.lane.b32.xlu0 %v1424_v32, %s2147_s11 }
 0x3ad   : > { %v1412_v52 = vsub.f32 2.0, %v1404_v34  ;;  %v1426_v42 = vmul.f32 %v1418_v44, %v2731_v56 }
 0x3af   : > { %v1420_v37 = vmul.f32 %v2120_v55, %v1412_v52  ;;  %1535 = vrot.lane.b32.xlu0 %v1426_v42, %s2147_s11 }
 0x3b1   : > { %v1428_v29 = vmul.f32 %v1420_v37, %v2735_v63 }
 0x3b3   : > { %1539 = vrot.lane.b32.xlu0 %v1428_v29, %s2147_s11 }
 0x3b7   : > { %1475 = vrot.lane.b32.xlu0 %v2532_v38, %s2145_s20 }
 0x3b8   : > { %v1095_v20 = vpop.xlane.xlu0 %1094 }
 0x3b9   : > { %2121 = vlog2.f32 %v1095_v20 }
 0x3bc   : > { %v1101_v43 = vpop.xlane.xlu0 %1100 }
 0x3bd   : > { %2123 = vlog2.f32 %v1101_v43 }
 0x3c6   : > { %v2122_v56 = vpop.eup %2121 }
 0x3c7   : > { %v1118_v12 = vmul.f32 0.6931472, %v2122_v56 }
 0x3c9   : > { %v1133_v63 = vsub.f32 %v2744_v22, %v1118_v12 }
 0x3ca   : > { %v2124_v13 = vpop.eup %2123 }
 0x3cb   : > { %v1122_v16 = vmul.f32 0.6931472, %v2124_v13 }
 0x3cd   : > { %v1135_v49 = vsub.f32 %v2748_v15, %v1122_v16 }
 0x3d1   : > { %v1098_v4 = vpop.xlane.xlu1 %1097 }
 0x3d5   : > { %v1104_v23 = vpop.xlane.xlu1 %1103 }
 0x3d9   : > { %v1110_v5 = vpop.xlane.xlu1 %1109 }
 0x3db   : > { %v1107_v9 = vpop.xlane.xlu0 %1106 }
 0x3dc   : > { %2125 = vlog2.f32 %v1107_v9 }
 0x3dd   : > { %2127 = vlog2.f32 %v1098_v4 }
 0x3de   : > { %2129 = vlog2.f32 %v1104_v23 }
 0x3df   : > { %2131 = vlog2.f32 %v1110_v5 }
 0x3e9   : > { %v2126_v59 = vpop.eup %2125 }
 0x3ea   : > { %v1126_v22 = vmul.f32 0.6931472, %v2126_v59  ;;  %v2128_v40 = vpop.eup %2127 }
 0x3eb   : > { %v1120_v47 = vmul.f32 0.6931472, %v2128_v40  ;;  %v2130_v53 = vpop.eup %2129 }
 0x3ec   : > { %v1137_v25 = vsub.f32 %v2774_v8, %v1126_v22  ;;  %v2132_v39 = vpop.eup %2131 }
 0x3ed   : > { %v1134_v58 = vsub.f32 %v2757_v45, %v1120_v47  ;;  %v1128_v60 = vmul.f32 0.6931472, %v2132_v39 }
 0x3ef   : > { %v1138_v52 = vsub.f32 %v2768_v18, %v1128_v60 }
 0x3f8   : > { %v1116_v31 = vpop.xlane.xlu1 %1115 }
 0x3f9   : > { %2133 = vlog2.f32 %v1116_v31 }
 0x401   : > { %v1526_v38 = vpop.permute.xlu1 %1525 }
 0x402   : > { %v1581_v46 = vsel %vm1044_vm1, %v1133_v63, %v1526_v38 }
 0x403   : > { %v1590_v57 = vsel %vm1589_vm2, %v1581_v46, %v2753_v27 }
 0x404   : > { %v1599_v17 = vsel %vm1598_vm3, %v1590_v57, 0.0 }
 0x405   : > { %1607 = vst [vmem:[%s2828_s30] sm:$0xff] %v1599_v17  ;;  %v1530_v21 = vpop.permute.xlu1 %1529 }
 0x406   : > { %v1583_v24 = vsel %vm1044_vm1, %v1135_v49, %v1530_v21 }
 0x407   : > { %v1592_v33 = vsel %vm1589_vm2, %v1583_v24, %v2759_v48 }
 0x408   : > { %v1601_v27 = vsel %vm1598_vm3, %v1592_v33, 0.0 }
 0x409   : > { %1609 = vst [vmem:[%s2828_s30 + $0x10] sm:$0xff] %v1601_v27  ;;  %v1534_v15 = vpop.permute.xlu1 %1533 }
 0x40a   : > { %v1585_v26 = vsel %vm1044_vm1, %v1137_v25, %v1534_v15 }
 0x40b   : > { %v1594_v11 = vsel %vm1589_vm2, %v1585_v26, %v2781_v54  ;;  %v1124_v54 = vmul.f32 0.6931472, %v2130_v53 }
 0x40c   : > { %v1603_v30 = vsel %vm1598_vm3, %v1594_v11, 0.0 }
 0x40d   : > { %1611 = vst [vmem:[%s2828_s30 + $0x20] sm:$0xff] %v1603_v30  ;;  %v1538_v35 = vpop.permute.xlu1 %1537  ;;  %v1136_v1 = vsub.f32 %v2764_v36, %v1124_v54 }
 0x410   : > { %v1113_v48 = vpop.xlane.xlu0 %1112 }
 0x411   : > { %v1474_v14 = vpop.permute.xlu1 %1473  ;;  %2135 = vlog2.f32 %v1113_v48 }
 0x412   : > { %v1499_v8 = vsel %vm914_vm0, %v2459_v62, %v1474_v14  ;;  %v2134_v62 = vpop.eup %2133 }
 0x413   : > { %1514 = vst [vmem:[%s2574_s22 + $0x68] sm:$0xff] %v1499_v8 }
 0x419   : > { %v1528_v41 = vpop.permute.xlu0 %1527 }
 0x41a   : > { %v1582_v7 = vsel %vm1044_vm1, %v1134_v58, %v1528_v41 }
 0x41b   : > { %v1591_v61 = vsel %vm1589_vm2, %v1582_v7, %v2727_v51  ;;  %v1132_v51 = vmul.f32 0.6931472, %v2134_v62 }
 0x41c   : > { %v1600_v3 = vsel %vm1598_vm3, %v1591_v61, 0.0 }
 0x41d   : > { %1608 = vst [vmem:[%s2828_s30 + $0x8] sm:$0xff] %v1600_v3  ;;  %v1532_v32 = vpop.permute.xlu0 %1531 }
 0x41e   : > { %v2136_v55 = vpop.eup %2135  ;;  %v1584_v45 = vsel %vm1044_vm1, %v1136_v1, %v1532_v32 }
 0x41f   : > { %v1130_v44 = vmul.f32 0.6931472, %v2136_v55  ;;  %v1593_v34 = vsel %vm1589_vm2, %v1584_v45, %v2741_v2  ;;  %v1140_v2 = vsub.f32 %v2784_v28, %v1132_v51 }
 0x420   : > { %v1602_v36 = vsel %vm1598_vm3, %v1593_v34, 0.0 }
 0x421   : > { %v1139_v42 = vsub.f32 %v2791_v50, %v1130_v44  ;;  %1610 = vst [vmem:[%s2828_s30 + $0x18] sm:$0xff] %v1602_v36  ;;  %v1536_v37 = vpop.permute.xlu0 %1535 }
 0x422   : > { %v1586_v29 = vsel %vm1044_vm1, %v1138_v52, %v1536_v37 }
 0x423   : > { %v1587_v20 = vsel %vm1044_vm1, %v1139_v42, %v1538_v35  ;;  %v1595_v43 = vsel %vm1589_vm2, %v1586_v29, %v2770_v19 }
 0x424   : > { %v1596_v18 = vsel %vm1589_vm2, %v1587_v20, %v2798_v0  ;;  %v1604_v4 = vsel %vm1598_vm3, %v1595_v43, 0.0 }
 0x425   : > { %v1605_v50 = vsel %vm1598_vm3, %v1596_v18, 0.0  ;;  %1612 = vst [vmem:[%s2828_s30 + $0x28] sm:$0xff] %v1604_v4  ;;  %v1540_v9 = vpop.permute.xlu0 %1539 }
 0x426   : > { %1613 = vst [vmem:[%s2828_s30 + $0x30] sm:$0xff] %v1605_v50  ;;  %v1588_v23 = vsel %vm1044_vm1, %v1140_v2, %v1540_v9 }
 0x427   : > { %v1597_v56 = vsel %vm1589_vm2, %v1588_v23, %v2788_v6 }
 0x428   : > { %v1606_v5 = vsel %vm1598_vm3, %v1597_v56, 0.0 }
 0x429   : > { %1614 = vst [vmem:[%s2828_s30 + $0x38] sm:$0xff] %v1606_v5  ;;  %v1476_v19 = vpop.permute.xlu0 %1475 }
 0x42a   : > { %v1500_v28 = vsel %vm914_vm0, %v2481_v10, %v1476_v19 }
 0x42b   : > { %1516 = vst [vmem:[%s2574_s22 + $0x78] sm:$0xff] %v1500_v28 }
 0x42c PF: > { %s21_s13 = sadd.s32 1, %s2143_s13  }
 0x42d   : > { %p18_p4 = scmp.ge.s32.totalorder %s21_s13, 4  }
 0x42f   :  { %20 = sbr.rel (!%p18_p4) target bundleno = 1 (0x1), region = 104 }

</bundles_post_ra>
